<compile_context>
chip_gen: v7x
topology: tpu7x:2x2x1
jax: 0.10.0
libtpu: 0.0.40
codegen_flags: <defaults>
</compile_context>

<pallas_src>
import jax
import jax.numpy as jnp
from jax.experimental import pallas as pl
from jax.experimental.pallas import tpu as pltpu


def gru_kernel(e_ref, w_ih_ref, b_proj_ref, w_hh_ref, b_hhn_ref,
               h_out_ref, gi_ref):
    """Single-invocation GRU forward (input projection + time recurrence).

    e_ref      : (T*B, E)  time-major embedded tokens, flattened over (T, B)
    w_ih_ref   : (E, 3H)   input->gates weights (r|z|n on the last dim)
    b_proj_ref : (1, 3H)   b_ih with b_hh[r|z] pre-folded in (n slice = b_ih_n)
    w_hh_ref   : (H, 3H)   hidden->gates weights
    b_hhn_ref  : (1, H)    b_hh for the n gate only (must stay inside r * (.))
    h_out_ref  : (B, H)    output: final hidden state
    gi_ref     : (T*B, 3H) VMEM scratch holding the precomputed input projection
    """
    TB = e_ref.shape[0]
    B, H = h_out_ref.shape
    T = TB // B

    # One big, well-shaped MXU matmul for all time steps at once.
    gi_ref[...] = (jnp.dot(e_ref[...], w_ih_ref[...],
                           preferred_element_type=jnp.float32)
                   + b_proj_ref[...])

    w_hh = w_hh_ref[...]          # (H, 3H), hoisted out of the loop
    b_hh_n = b_hhn_ref[...]       # (1, H)

    def step(t, h):
        row = pl.multiple_of(t * B, B)
        gi = gi_ref[pl.ds(row, B), :]                              # (B, 3H)
        gh = jnp.dot(h, w_hh, preferred_element_type=jnp.float32)  # (B, 3H)
        r = jax.nn.sigmoid(gi[:, 0:H] + gh[:, 0:H])
        z = jax.nn.sigmoid(gi[:, H:2 * H] + gh[:, H:2 * H])
        # PyTorch GRU: n = tanh(gi_n + r * (gh_n + b_hh_n))
        n = jnp.tanh(gi[:, 2 * H:3 * H] + r * (gh[:, 2 * H:3 * H] + b_hh_n))
        return n + z * (h - n)     # == (1 - z) * n + z * h

    h0 = jnp.zeros((B, H), jnp.float32)
    h_out_ref[...] = jax.lax.fori_loop(0, T, step, h0, unroll=True)


@jax.jit
def sentiment_forward(tokens, embed_table, w_ih, w_hh, b_ih, b_hh, w_fc, b_fc):
    """tokens: (B, T) int32 token ids.  Returns logits (B, O)."""
    B, T = tokens.shape
    E = embed_table.shape[1]
    H = w_hh.shape[0]

    # Fuse the time-major transpose into the gather: gather (T, B) ids directly.
    e = jnp.take(embed_table, tokens.T, axis=0)        # (T, B, E)
    e = e.reshape(T * B, E)

    # Pre-fold b_hh[r|z] into the projection bias; keep b_hh[n] separate.
    b_proj = jnp.concatenate(
        [b_ih[:, :2 * H] + b_hh[:, :2 * H], b_ih[:, 2 * H:]], axis=1)  # (1, 3H)
    b_hh_n = b_hh[:, 2 * H:]                                            # (1, H)

    h_last = pl.pallas_call(
        gru_kernel,
        out_shape=jax.ShapeDtypeStruct((B, H), jnp.float32),
        scratch_shapes=[pltpu.VMEM((T * B, 3 * H), jnp.float32)],
    )(e, w_ih, b_proj, w_hh, b_hh_n)

    # Tiny (H, O=4) FC stays in XLA: O < 128 lanes would force masked stores
    # inside the kernel; h_last at (B, 128) is exactly lane-dense.
    return h_last @ w_fc + b_fc


def reference_forward(tokens, embed_table, w_ih, w_hh, b_ih, b_hh, w_fc, b_fc):
    """Pure-JAX reference with PyTorch GRU semantics (gate order r, z, n)."""
    H = w_hh.shape[0]
    e = jnp.take(embed_table, tokens, axis=0)          # (B, T, E)
    B = e.shape[0]

    def step(h, x_t):
        gi = x_t @ w_ih + b_ih
        gh = h @ w_hh + b_hh
        r = jax.nn.sigmoid(gi[:, 0:H] + gh[:, 0:H])
        z = jax.nn.sigmoid(gi[:, H:2 * H] + gh[:, H:2 * H])
        n = jnp.tanh(gi[:, 2 * H:3 * H] + r * gh[:, 2 * H:3 * H])
        h_new = (1.0 - z) * n + z * h
        return h_new, None

    h0 = jnp.zeros((B, H), jnp.float32)
    h_last, _ = jax.lax.scan(step, h0, jnp.transpose(e, (1, 0, 2)))
    return h_last @ w_fc + b_fc


if __name__ == "__main__":
    # Small shapes consistent with the module's forward (scaled-down dims).
    VOCAB = 50
    EMBED_DIM = 256     # embedding_dim (scaled down from 1024)
    HIDDEN_DIM = 128    # hidden_dim   (scaled down from 512)
    OUTPUT_DIM = 4
    BATCH = 8
    SEQ = 8

    key = jax.random.PRNGKey(0)
    k_emb, k_wih, k_whh, k_bih, k_bhh, k_wfc, k_bfc, k_tok = jax.random.split(key, 8)

    embed_table = jax.random.normal(k_emb, (VOCAB, EMBED_DIM), jnp.float32) * 0.1
    w_ih = jax.random.normal(k_wih, (EMBED_DIM, 3 * HIDDEN_DIM), jnp.float32) * 0.05
    w_hh = jax.random.normal(k_whh, (HIDDEN_DIM, 3 * HIDDEN_DIM), jnp.float32) * 0.05
    b_ih = jax.random.normal(k_bih, (1, 3 * HIDDEN_DIM), jnp.float32) * 0.05
    b_hh = jax.random.normal(k_bhh, (1, 3 * HIDDEN_DIM), jnp.float32) * 0.05
    w_fc = jax.random.normal(k_wfc, (HIDDEN_DIM, OUTPUT_DIM), jnp.float32) * 0.05
    b_fc = jax.random.normal(k_bfc, (1, OUTPUT_DIM), jnp.float32) * 0.05

    tokens = jax.random.randint(k_tok, (BATCH, SEQ), 0, VOCAB, dtype=jnp.int32)

    out = sentiment_forward(tokens, embed_table, w_ih, w_hh, b_ih, b_hh, w_fc, b_fc)
    out = jax.block_until_ready(out)

    ref = reference_forward(tokens, embed_table, w_ih, w_hh, b_ih, b_hh, w_fc, b_fc)
    assert out.shape == (BATCH, OUTPUT_DIM)
    assert jnp.allclose(out, ref, atol=1e-4, rtol=1e-4), "Pallas GRU mismatch vs reference"

    print("KERNEL_OK")
</pallas_src>

<mosaic_0001>
module attributes {stable_mosaic.version = 11 : i64} {
  func.func @gru_kernel(%arg0: memref<64x256xf32, #tpu.memory_space<vmem>>, %arg1: memref<256x384xf32, #tpu.memory_space<vmem>>, %arg2: memref<1x384xf32, #tpu.memory_space<vmem>>, %arg3: memref<128x384xf32, #tpu.memory_space<vmem>>, %arg4: memref<1x128xf32, #tpu.memory_space<vmem>>, %arg5: memref<8x128xf32, #tpu.memory_space<vmem>>, %arg6: memref<64x384xf32, #tpu.memory_space<vmem>>) attributes {dimension_semantics = [], scalar_prefetch = 0 : i64, scratch_operands = 1 : i64, tpu.core_type = #tpu.core_type<tc>} {
    %c0 = arith.constant 0 : index
    %c0_0 = arith.constant 0 : index
    %0 = vector.load %arg0[%c0, %c0_0] : memref<64x256xf32, #tpu.memory_space<vmem>>, vector<64x256xf32>
    %c0_1 = arith.constant 0 : index
    %c0_2 = arith.constant 0 : index
    %1 = vector.load %arg1[%c0_1, %c0_2] : memref<256x384xf32, #tpu.memory_space<vmem>>, vector<256x384xf32>
    %cst = arith.constant dense<0.000000e+00> : vector<64x384xf32>
    %2 = tpu.matmul %0, %1, %cst {dimension_numbers = #tpu.dot_dimension_numbers<[1], [0], [0], [1], [0, 0, 1, 1], [], []>} : vector<64x256xf32>, vector<256x384xf32>, vector<64x384xf32> -> vector<64x384xf32>
    %c0_3 = arith.constant 0 : index
    %c0_4 = arith.constant 0 : index
    %3 = vector.load %arg2[%c0_3, %c0_4] : memref<1x384xf32, #tpu.memory_space<vmem>>, vector<1x384xf32>
    %4 = vector.broadcast %3 : vector<1x384xf32> to vector<64x384xf32>
    %5 = arith.addf %2, %4 : vector<64x384xf32>
    %c0_5 = arith.constant 0 : index
    %c0_6 = arith.constant 0 : index
    %6 = vector.load %arg6[%c0_5, %c0_6] : memref<64x384xf32, #tpu.memory_space<vmem>>, vector<64x384xf32>
    tpu.vector_store %arg6[%c0_5, %c0_6], %5 {strides = array<i32>} : memref<64x384xf32, #tpu.memory_space<vmem>>, vector<64x384xf32>,
    %c0_7 = arith.constant 0 : index
    %c0_8 = arith.constant 0 : index
    %7 = vector.load %arg3[%c0_7, %c0_8] : memref<128x384xf32, #tpu.memory_space<vmem>>, vector<128x384xf32>
    %c0_9 = arith.constant 0 : index
    %c0_10 = arith.constant 0 : index
    %8 = vector.load %arg4[%c0_9, %c0_10] : memref<1x128xf32, #tpu.memory_space<vmem>>, vector<1x128xf32>
    %cst_11 = arith.constant 0.000000e+00 : f32
    %9 = vector.broadcast %cst_11 : f32 to vector<8x128xf32>
    %c0_i32 = arith.constant 0 : i32
    %c8_i32 = arith.constant 8 : i32
    %10 = arith.muli %c0_i32, %c8_i32 : i32
    %11 = tpu.assume_multiple %10, 8 : i32
    %12 = arith.index_cast %11 : i32 to index
    %c0_12 = arith.constant 0 : index
    %13 = vector.load %arg6[%12, %c0_12] : memref<64x384xf32, #tpu.memory_space<vmem>>, vector<8x384xf32>
    %cst_13 = arith.constant dense<0.000000e+00> : vector<8x384xf32>
    %14 = tpu.matmul %9, %7, %cst_13 {dimension_numbers = #tpu.dot_dimension_numbers<[1], [0], [0], [1], [0, 0, 1, 1], [], []>} : vector<8x128xf32>, vector<128x384xf32>, vector<8x384xf32> -> vector<8x384xf32>
    %15 = vector.extract_strided_slice %13 {offsets = [0, 0], sizes = [8, 128], strides = [1, 1]} : vector<8x384xf32> to vector<8x128xf32>
    %16 = vector.extract_strided_slice %14 {offsets = [0, 0], sizes = [8, 128], strides = [1, 1]} : vector<8x384xf32> to vector<8x128xf32>
    %17 = arith.addf %15, %16 : vector<8x128xf32>
    %18 = arith.negf %17 : vector<8x128xf32>
    %19 = math.exp %18 : vector<8x128xf32>
    %cst_14 = arith.constant 1.000000e+00 : f32
    %20 = vector.broadcast %cst_14 : f32 to vector<8x128xf32>
    %21 = arith.addf %20, %19 : vector<8x128xf32>
    %22 = arith.divf %20, %21 : vector<8x128xf32>
    %23 = vector.extract_strided_slice %13 {offsets = [0, 128], sizes = [8, 128], strides = [1, 1]} : vector<8x384xf32> to vector<8x128xf32>
    %24 = vector.extract_strided_slice %14 {offsets = [0, 128], sizes = [8, 128], strides = [1, 1]} : vector<8x384xf32> to vector<8x128xf32>
    %25 = arith.addf %23, %24 : vector<8x128xf32>
    %26 = arith.negf %25 : vector<8x128xf32>
    %27 = math.exp %26 : vector<8x128xf32>
    %cst_15 = arith.constant 1.000000e+00 : f32
    %28 = vector.broadcast %cst_15 : f32 to vector<8x128xf32>
    %29 = arith.addf %28, %27 : vector<8x128xf32>
    %30 = arith.divf %28, %29 : vector<8x128xf32>
    %31 = vector.extract_strided_slice %13 {offsets = [0, 256], sizes = [8, 128], strides = [1, 1]} : vector<8x384xf32> to vector<8x128xf32>
    %32 = vector.extract_strided_slice %14 {offsets = [0, 256], sizes = [8, 128], strides = [1, 1]} : vector<8x384xf32> to vector<8x128xf32>
    %33 = vector.broadcast %8 : vector<1x128xf32> to vector<8x128xf32>
    %34 = arith.addf %32, %33 : vector<8x128xf32>
    %35 = arith.mulf %22, %34 : vector<8x128xf32>
    %36 = arith.addf %31, %35 : vector<8x128xf32>
    %37 = math.tanh %36 : vector<8x128xf32>
    %38 = arith.subf %9, %37 : vector<8x128xf32>
    %39 = arith.mulf %30, %38 : vector<8x128xf32>
    %40 = arith.addf %37, %39 : vector<8x128xf32>
    %c1_i32 = arith.constant 1 : i32
    %c8_i32_16 = arith.constant 8 : i32
    %41 = arith.muli %c1_i32, %c8_i32_16 : i32
    %42 = tpu.assume_multiple %41, 8 : i32
    %43 = arith.index_cast %42 : i32 to index
    %c0_17 = arith.constant 0 : index
    %44 = vector.load %arg6[%43, %c0_17] : memref<64x384xf32, #tpu.memory_space<vmem>>, vector<8x384xf32>
    %cst_18 = arith.constant dense<0.000000e+00> : vector<8x384xf32>
    %45 = tpu.matmul %40, %7, %cst_18 {dimension_numbers = #tpu.dot_dimension_numbers<[1], [0], [0], [1], [0, 0, 1, 1], [], []>} : vector<8x128xf32>, vector<128x384xf32>, vector<8x384xf32> -> vector<8x384xf32>
    %46 = vector.extract_strided_slice %44 {offsets = [0, 0], sizes = [8, 128], strides = [1, 1]} : vector<8x384xf32> to vector<8x128xf32>
    %47 = vector.extract_strided_slice %45 {offsets = [0, 0], sizes = [8, 128], strides = [1, 1]} : vector<8x384xf32> to vector<8x128xf32>
    %48 = arith.addf %46, %47 : vector<8x128xf32>
    %49 = arith.negf %48 : vector<8x128xf32>
    %50 = math.exp %49 : vector<8x128xf32>
    %cst_19 = arith.constant 1.000000e+00 : f32
    %51 = vector.broadcast %cst_19 : f32 to vector<8x128xf32>
    %52 = arith.addf %51, %50 : vector<8x128xf32>
    %53 = arith.divf %51, %52 : vector<8x128xf32>
    %54 = vector.extract_strided_slice %44 {offsets = [0, 128], sizes = [8, 128], strides = [1, 1]} : vector<8x384xf32> to vector<8x128xf32>
    %55 = vector.extract_strided_slice %45 {offsets = [0, 128], sizes = [8, 128], strides = [1, 1]} : vector<8x384xf32> to vector<8x128xf32>
    %56 = arith.addf %54, %55 : vector<8x128xf32>
    %57 = arith.negf %56 : vector<8x128xf32>
    %58 = math.exp %57 : vector<8x128xf32>
    %cst_20 = arith.constant 1.000000e+00 : f32
    %59 = vector.broadcast %cst_20 : f32 to vector<8x128xf32>
    %60 = arith.addf %59, %58 : vector<8x128xf32>
    %61 = arith.divf %59, %60 : vector<8x128xf32>
    %62 = vector.extract_strided_slice %44 {offsets = [0, 256], sizes = [8, 128], strides = [1, 1]} : vector<8x384xf32> to vector<8x128xf32>
    %63 = vector.extract_strided_slice %45 {offsets = [0, 256], sizes = [8, 128], strides = [1, 1]} : vector<8x384xf32> to vector<8x128xf32>
    %64 = vector.broadcast %8 : vector<1x128xf32> to vector<8x128xf32>
    %65 = arith.addf %63, %64 : vector<8x128xf32>
    %66 = arith.mulf %53, %65 : vector<8x128xf32>
    %67 = arith.addf %62, %66 : vector<8x128xf32>
    %68 = math.tanh %67 : vector<8x128xf32>
    %69 = arith.subf %40, %68 : vector<8x128xf32>
    %70 = arith.mulf %61, %69 : vector<8x128xf32>
    %71 = arith.addf %68, %70 : vector<8x128xf32>
    %c2_i32 = arith.constant 2 : i32
    %c8_i32_21 = arith.constant 8 : i32
    %72 = arith.muli %c2_i32, %c8_i32_21 : i32
    %73 = tpu.assume_multiple %72, 8 : i32
    %74 = arith.index_cast %73 : i32 to index
    %c0_22 = arith.constant 0 : index
    %75 = vector.load %arg6[%74, %c0_22] : memref<64x384xf32, #tpu.memory_space<vmem>>, vector<8x384xf32>
    %cst_23 = arith.constant dense<0.000000e+00> : vector<8x384xf32>
    %76 = tpu.matmul %71, %7, %cst_23 {dimension_numbers = #tpu.dot_dimension_numbers<[1], [0], [0], [1], [0, 0, 1, 1], [], []>} : vector<8x128xf32>, vector<128x384xf32>, vector<8x384xf32> -> vector<8x384xf32>
    %77 = vector.extract_strided_slice %75 {offsets = [0, 0], sizes = [8, 128], strides = [1, 1]} : vector<8x384xf32> to vector<8x128xf32>
    %78 = vector.extract_strided_slice %76 {offsets = [0, 0], sizes = [8, 128], strides = [1, 1]} : vector<8x384xf32> to vector<8x128xf32>
    %79 = arith.addf %77, %78 : vector<8x128xf32>
    %80 = arith.negf %79 : vector<8x128xf32>
    %81 = math.exp %80 : vector<8x128xf32>
    %cst_24 = arith.constant 1.000000e+00 : f32
    %82 = vector.broadcast %cst_24 : f32 to vector<8x128xf32>
    %83 = arith.addf %82, %81 : vector<8x128xf32>
    %84 = arith.divf %82, %83 : vector<8x128xf32>
    %85 = vector.extract_strided_slice %75 {offsets = [0, 128], sizes = [8, 128], strides = [1, 1]} : vector<8x384xf32> to vector<8x128xf32>
    %86 = vector.extract_strided_slice %76 {offsets = [0, 128], sizes = [8, 128], strides = [1, 1]} : vector<8x384xf32> to vector<8x128xf32>
    %87 = arith.addf %85, %86 : vector<8x128xf32>
    %88 = arith.negf %87 : vector<8x128xf32>
    %89 = math.exp %88 : vector<8x128xf32>
    %cst_25 = arith.constant 1.000000e+00 : f32
    %90 = vector.broadcast %cst_25 : f32 to vector<8x128xf32>
    %91 = arith.addf %90, %89 : vector<8x128xf32>
    %92 = arith.divf %90, %91 : vector<8x128xf32>
    %93 = vector.extract_strided_slice %75 {offsets = [0, 256], sizes = [8, 128], strides = [1, 1]} : vector<8x384xf32> to vector<8x128xf32>
    %94 = vector.extract_strided_slice %76 {offsets = [0, 256], sizes = [8, 128], strides = [1, 1]} : vector<8x384xf32> to vector<8x128xf32>
    %95 = vector.broadcast %8 : vector<1x128xf32> to vector<8x128xf32>
    %96 = arith.addf %94, %95 : vector<8x128xf32>
    %97 = arith.mulf %84, %96 : vector<8x128xf32>
    %98 = arith.addf %93, %97 : vector<8x128xf32>
    %99 = math.tanh %98 : vector<8x128xf32>
    %100 = arith.subf %71, %99 : vector<8x128xf32>
    %101 = arith.mulf %92, %100 : vector<8x128xf32>
    %102 = arith.addf %99, %101 : vector<8x128xf32>
    %c3_i32 = arith.constant 3 : i32
    %c8_i32_26 = arith.constant 8 : i32
    %103 = arith.muli %c3_i32, %c8_i32_26 : i32
    %104 = tpu.assume_multiple %103, 8 : i32
    %105 = arith.index_cast %104 : i32 to index
    %c0_27 = arith.constant 0 : index
    %106 = vector.load %arg6[%105, %c0_27] : memref<64x384xf32, #tpu.memory_space<vmem>>, vector<8x384xf32>
    %cst_28 = arith.constant dense<0.000000e+00> : vector<8x384xf32>
    %107 = tpu.matmul %102, %7, %cst_28 {dimension_numbers = #tpu.dot_dimension_numbers<[1], [0], [0], [1], [0, 0, 1, 1], [], []>} : vector<8x128xf32>, vector<128x384xf32>, vector<8x384xf32> -> vector<8x384xf32>
    %108 = vector.extract_strided_slice %106 {offsets = [0, 0], sizes = [8, 128], strides = [1, 1]} : vector<8x384xf32> to vector<8x128xf32>
    %109 = vector.extract_strided_slice %107 {offsets = [0, 0], sizes = [8, 128], strides = [1, 1]} : vector<8x384xf32> to vector<8x128xf32>
    %110 = arith.addf %108, %109 : vector<8x128xf32>
    %111 = arith.negf %110 : vector<8x128xf32>
    %112 = math.exp %111 : vector<8x128xf32>
    %cst_29 = arith.constant 1.000000e+00 : f32
    %113 = vector.broadcast %cst_29 : f32 to vector<8x128xf32>
    %114 = arith.addf %113, %112 : vector<8x128xf32>
    %115 = arith.divf %113, %114 : vector<8x128xf32>
    %116 = vector.extract_strided_slice %106 {offsets = [0, 128], sizes = [8, 128], strides = [1, 1]} : vector<8x384xf32> to vector<8x128xf32>
    %117 = vector.extract_strided_slice %107 {offsets = [0, 128], sizes = [8, 128], strides = [1, 1]} : vector<8x384xf32> to vector<8x128xf32>
    %118 = arith.addf %116, %117 : vector<8x128xf32>
    %119 = arith.negf %118 : vector<8x128xf32>
    %120 = math.exp %119 : vector<8x128xf32>
    %cst_30 = arith.constant 1.000000e+00 : f32
    %121 = vector.broadcast %cst_30 : f32 to vector<8x128xf32>
    %122 = arith.addf %121, %120 : vector<8x128xf32>
    %123 = arith.divf %121, %122 : vector<8x128xf32>
    %124 = vector.extract_strided_slice %106 {offsets = [0, 256], sizes = [8, 128], strides = [1, 1]} : vector<8x384xf32> to vector<8x128xf32>
    %125 = vector.extract_strided_slice %107 {offsets = [0, 256], sizes = [8, 128], strides = [1, 1]} : vector<8x384xf32> to vector<8x128xf32>
    %126 = vector.broadcast %8 : vector<1x128xf32> to vector<8x128xf32>
    %127 = arith.addf %125, %126 : vector<8x128xf32>
    %128 = arith.mulf %115, %127 : vector<8x128xf32>
    %129 = arith.addf %124, %128 : vector<8x128xf32>
    %130 = math.tanh %129 : vector<8x128xf32>
    %131 = arith.subf %102, %130 : vector<8x128xf32>
    %132 = arith.mulf %123, %131 : vector<8x128xf32>
    %133 = arith.addf %130, %132 : vector<8x128xf32>
    %c4_i32 = arith.constant 4 : i32
    %c8_i32_31 = arith.constant 8 : i32
    %134 = arith.muli %c4_i32, %c8_i32_31 : i32
    %135 = tpu.assume_multiple %134, 8 : i32
    %136 = arith.index_cast %135 : i32 to index
    %c0_32 = arith.constant 0 : index
    %137 = vector.load %arg6[%136, %c0_32] : memref<64x384xf32, #tpu.memory_space<vmem>>, vector<8x384xf32>
    %cst_33 = arith.constant dense<0.000000e+00> : vector<8x384xf32>
    %138 = tpu.matmul %133, %7, %cst_33 {dimension_numbers = #tpu.dot_dimension_numbers<[1], [0], [0], [1], [0, 0, 1, 1], [], []>} : vector<8x128xf32>, vector<128x384xf32>, vector<8x384xf32> -> vector<8x384xf32>
    %139 = vector.extract_strided_slice %137 {offsets = [0, 0], sizes = [8, 128], strides = [1, 1]} : vector<8x384xf32> to vector<8x128xf32>
    %140 = vector.extract_strided_slice %138 {offsets = [0, 0], sizes = [8, 128], strides = [1, 1]} : vector<8x384xf32> to vector<8x128xf32>
    %141 = arith.addf %139, %140 : vector<8x128xf32>
    %142 = arith.negf %141 : vector<8x128xf32>
    %143 = math.exp %142 : vector<8x128xf32>
    %cst_34 = arith.constant 1.000000e+00 : f32
    %144 = vector.broadcast %cst_34 : f32 to vector<8x128xf32>
    %145 = arith.addf %144, %143 : vector<8x128xf32>
    %146 = arith.divf %144, %145 : vector<8x128xf32>
    %147 = vector.extract_strided_slice %137 {offsets = [0, 128], sizes = [8, 128], strides = [1, 1]} : vector<8x384xf32> to vector<8x128xf32>
    %148 = vector.extract_strided_slice %138 {offsets = [0, 128], sizes = [8, 128], strides = [1, 1]} : vector<8x384xf32> to vector<8x128xf32>
    %149 = arith.addf %147, %148 : vector<8x128xf32>
    %150 = arith.negf %149 : vector<8x128xf32>
    %151 = math.exp %150 : vector<8x128xf32>
    %cst_35 = arith.constant 1.000000e+00 : f32
    %152 = vector.broadcast %cst_35 : f32 to vector<8x128xf32>
    %153 = arith.addf %152, %151 : vector<8x128xf32>
    %154 = arith.divf %152, %153 : vector<8x128xf32>
    %155 = vector.extract_strided_slice %137 {offsets = [0, 256], sizes = [8, 128], strides = [1, 1]} : vector<8x384xf32> to vector<8x128xf32>
    %156 = vector.extract_strided_slice %138 {offsets = [0, 256], sizes = [8, 128], strides = [1, 1]} : vector<8x384xf32> to vector<8x128xf32>
    %157 = vector.broadcast %8 : vector<1x128xf32> to vector<8x128xf32>
    %158 = arith.addf %156, %157 : vector<8x128xf32>
    %159 = arith.mulf %146, %158 : vector<8x128xf32>
    %160 = arith.addf %155, %159 : vector<8x128xf32>
    %161 = math.tanh %160 : vector<8x128xf32>
    %162 = arith.subf %133, %161 : vector<8x128xf32>
    %163 = arith.mulf %154, %162 : vector<8x128xf32>
    %164 = arith.addf %161, %163 : vector<8x128xf32>
    %c5_i32 = arith.constant 5 : i32
    %c8_i32_36 = arith.constant 8 : i32
    %165 = arith.muli %c5_i32, %c8_i32_36 : i32
    %166 = tpu.assume_multiple %165, 8 : i32
    %167 = arith.index_cast %166 : i32 to index
    %c0_37 = arith.constant 0 : index
    %168 = vector.load %arg6[%167, %c0_37] : memref<64x384xf32, #tpu.memory_space<vmem>>, vector<8x384xf32>
    %cst_38 = arith.constant dense<0.000000e+00> : vector<8x384xf32>
    %169 = tpu.matmul %164, %7, %cst_38 {dimension_numbers = #tpu.dot_dimension_numbers<[1], [0], [0], [1], [0, 0, 1, 1], [], []>} : vector<8x128xf32>, vector<128x384xf32>, vector<8x384xf32> -> vector<8x384xf32>
    %170 = vector.extract_strided_slice %168 {offsets = [0, 0], sizes = [8, 128], strides = [1, 1]} : vector<8x384xf32> to vector<8x128xf32>
    %171 = vector.extract_strided_slice %169 {offsets = [0, 0], sizes = [8, 128], strides = [1, 1]} : vector<8x384xf32> to vector<8x128xf32>
    %172 = arith.addf %170, %171 : vector<8x128xf32>
    %173 = arith.negf %172 : vector<8x128xf32>
    %174 = math.exp %173 : vector<8x128xf32>
    %cst_39 = arith.constant 1.000000e+00 : f32
    %175 = vector.broadcast %cst_39 : f32 to vector<8x128xf32>
    %176 = arith.addf %175, %174 : vector<8x128xf32>
    %177 = arith.divf %175, %176 : vector<8x128xf32>
    %178 = vector.extract_strided_slice %168 {offsets = [0, 128], sizes = [8, 128], strides = [1, 1]} : vector<8x384xf32> to vector<8x128xf32>
    %179 = vector.extract_strided_slice %169 {offsets = [0, 128], sizes = [8, 128], strides = [1, 1]} : vector<8x384xf32> to vector<8x128xf32>
    %180 = arith.addf %178, %179 : vector<8x128xf32>
    %181 = arith.negf %180 : vector<8x128xf32>
    %182 = math.exp %181 : vector<8x128xf32>
    %cst_40 = arith.constant 1.000000e+00 : f32
    %183 = vector.broadcast %cst_40 : f32 to vector<8x128xf32>
    %184 = arith.addf %183, %182 : vector<8x128xf32>
    %185 = arith.divf %183, %184 : vector<8x128xf32>
    %186 = vector.extract_strided_slice %168 {offsets = [0, 256], sizes = [8, 128], strides = [1, 1]} : vector<8x384xf32> to vector<8x128xf32>
    %187 = vector.extract_strided_slice %169 {offsets = [0, 256], sizes = [8, 128], strides = [1, 1]} : vector<8x384xf32> to vector<8x128xf32>
    %188 = vector.broadcast %8 : vector<1x128xf32> to vector<8x128xf32>
    %189 = arith.addf %187, %188 : vector<8x128xf32>
    %190 = arith.mulf %177, %189 : vector<8x128xf32>
    %191 = arith.addf %186, %190 : vector<8x128xf32>
    %192 = math.tanh %191 : vector<8x128xf32>
    %193 = arith.subf %164, %192 : vector<8x128xf32>
    %194 = arith.mulf %185, %193 : vector<8x128xf32>
    %195 = arith.addf %192, %194 : vector<8x128xf32>
    %c6_i32 = arith.constant 6 : i32
    %c8_i32_41 = arith.constant 8 : i32
    %196 = arith.muli %c6_i32, %c8_i32_41 : i32
    %197 = tpu.assume_multiple %196, 8 : i32
    %198 = arith.index_cast %197 : i32 to index
    %c0_42 = arith.constant 0 : index
    %199 = vector.load %arg6[%198, %c0_42] : memref<64x384xf32, #tpu.memory_space<vmem>>, vector<8x384xf32>
    %cst_43 = arith.constant dense<0.000000e+00> : vector<8x384xf32>
    %200 = tpu.matmul %195, %7, %cst_43 {dimension_numbers = #tpu.dot_dimension_numbers<[1], [0], [0], [1], [0, 0, 1, 1], [], []>} : vector<8x128xf32>, vector<128x384xf32>, vector<8x384xf32> -> vector<8x384xf32>
    %201 = vector.extract_strided_slice %199 {offsets = [0, 0], sizes = [8, 128], strides = [1, 1]} : vector<8x384xf32> to vector<8x128xf32>
    %202 = vector.extract_strided_slice %200 {offsets = [0, 0], sizes = [8, 128], strides = [1, 1]} : vector<8x384xf32> to vector<8x128xf32>
    %203 = arith.addf %201, %202 : vector<8x128xf32>
    %204 = arith.negf %203 : vector<8x128xf32>
    %205 = math.exp %204 : vector<8x128xf32>
    %cst_44 = arith.constant 1.000000e+00 : f32
    %206 = vector.broadcast %cst_44 : f32 to vector<8x128xf32>
    %207 = arith.addf %206, %205 : vector<8x128xf32>
    %208 = arith.divf %206, %207 : vector<8x128xf32>
    %209 = vector.extract_strided_slice %199 {offsets = [0, 128], sizes = [8, 128], strides = [1, 1]} : vector<8x384xf32> to vector<8x128xf32>
    %210 = vector.extract_strided_slice %200 {offsets = [0, 128], sizes = [8, 128], strides = [1, 1]} : vector<8x384xf32> to vector<8x128xf32>
    %211 = arith.addf %209, %210 : vector<8x128xf32>
    %212 = arith.negf %211 : vector<8x128xf32>
    %213 = math.exp %212 : vector<8x128xf32>
    %cst_45 = arith.constant 1.000000e+00 : f32
    %214 = vector.broadcast %cst_45 : f32 to vector<8x128xf32>
    %215 = arith.addf %214, %213 : vector<8x128xf32>
    %216 = arith.divf %214, %215 : vector<8x128xf32>
    %217 = vector.extract_strided_slice %199 {offsets = [0, 256], sizes = [8, 128], strides = [1, 1]} : vector<8x384xf32> to vector<8x128xf32>
    %218 = vector.extract_strided_slice %200 {offsets = [0, 256], sizes = [8, 128], strides = [1, 1]} : vector<8x384xf32> to vector<8x128xf32>
    %219 = vector.broadcast %8 : vector<1x128xf32> to vector<8x128xf32>
    %220 = arith.addf %218, %219 : vector<8x128xf32>
    %221 = arith.mulf %208, %220 : vector<8x128xf32>
    %222 = arith.addf %217, %221 : vector<8x128xf32>
    %223 = math.tanh %222 : vector<8x128xf32>
    %224 = arith.subf %195, %223 : vector<8x128xf32>
    %225 = arith.mulf %216, %224 : vector<8x128xf32>
    %226 = arith.addf %223, %225 : vector<8x128xf32>
    %c7_i32 = arith.constant 7 : i32
    %c8_i32_46 = arith.constant 8 : i32
    %227 = arith.muli %c7_i32, %c8_i32_46 : i32
    %228 = tpu.assume_multiple %227, 8 : i32
    %229 = arith.index_cast %228 : i32 to index
    %c0_47 = arith.constant 0 : index
    %230 = vector.load %arg6[%229, %c0_47] : memref<64x384xf32, #tpu.memory_space<vmem>>, vector<8x384xf32>
    %cst_48 = arith.constant dense<0.000000e+00> : vector<8x384xf32>
    %231 = tpu.matmul %226, %7, %cst_48 {dimension_numbers = #tpu.dot_dimension_numbers<[1], [0], [0], [1], [0, 0, 1, 1], [], []>} : vector<8x128xf32>, vector<128x384xf32>, vector<8x384xf32> -> vector<8x384xf32>
    %232 = vector.extract_strided_slice %230 {offsets = [0, 0], sizes = [8, 128], strides = [1, 1]} : vector<8x384xf32> to vector<8x128xf32>
    %233 = vector.extract_strided_slice %231 {offsets = [0, 0], sizes = [8, 128], strides = [1, 1]} : vector<8x384xf32> to vector<8x128xf32>
    %234 = arith.addf %232, %233 : vector<8x128xf32>
    %235 = arith.negf %234 : vector<8x128xf32>
    %236 = math.exp %235 : vector<8x128xf32>
    %cst_49 = arith.constant 1.000000e+00 : f32
    %237 = vector.broadcast %cst_49 : f32 to vector<8x128xf32>
    %238 = arith.addf %237, %236 : vector<8x128xf32>
    %239 = arith.divf %237, %238 : vector<8x128xf32>
    %240 = vector.extract_strided_slice %230 {offsets = [0, 128], sizes = [8, 128], strides = [1, 1]} : vector<8x384xf32> to vector<8x128xf32>
    %241 = vector.extract_strided_slice %231 {offsets = [0, 128], sizes = [8, 128], strides = [1, 1]} : vector<8x384xf32> to vector<8x128xf32>
    %242 = arith.addf %240, %241 : vector<8x128xf32>
    %243 = arith.negf %242 : vector<8x128xf32>
    %244 = math.exp %243 : vector<8x128xf32>
    %cst_50 = arith.constant 1.000000e+00 : f32
    %245 = vector.broadcast %cst_50 : f32 to vector<8x128xf32>
    %246 = arith.addf %245, %244 : vector<8x128xf32>
    %247 = arith.divf %245, %246 : vector<8x128xf32>
    %248 = vector.extract_strided_slice %230 {offsets = [0, 256], sizes = [8, 128], strides = [1, 1]} : vector<8x384xf32> to vector<8x128xf32>
    %249 = vector.extract_strided_slice %231 {offsets = [0, 256], sizes = [8, 128], strides = [1, 1]} : vector<8x384xf32> to vector<8x128xf32>
    %250 = vector.broadcast %8 : vector<1x128xf32> to vector<8x128xf32>
    %251 = arith.addf %249, %250 : vector<8x128xf32>
    %252 = arith.mulf %239, %251 : vector<8x128xf32>
    %253 = arith.addf %248, %252 : vector<8x128xf32>
    %254 = math.tanh %253 : vector<8x128xf32>
    %255 = arith.subf %226, %254 : vector<8x128xf32>
    %256 = arith.mulf %247, %255 : vector<8x128xf32>
    %257 = arith.addf %254, %256 : vector<8x128xf32>
    %c8_i32_51 = arith.constant 8 : i32
    %c0_52 = arith.constant 0 : index
    %c0_53 = arith.constant 0 : index
    %258 = vector.load %arg5[%c0_52, %c0_53] : memref<8x128xf32, #tpu.memory_space<vmem>>, vector<8x128xf32>
    tpu.vector_store %arg5[%c0_52, %c0_53], %257 {strides = array<i32>} : memref<8x128xf32, #tpu.memory_space<vmem>>, vector<8x128xf32>,
    return
  }
}

</mosaic_0001>

<bundles_post_ra>
// kernel: sentiment_forward.1
= control target key start
LH: loop header
LB: loop body
LE: loop exit
PB: predicated region body
PF: predicated region fallthrough
CT: control target
= control target key end

     0   :  { %vm2951_vm0 = vmmov 0   ;;  %s3853_s1 = inlined_call_operand.vmem [shape: f32[256,384], index: 1, kind: input, shape index: {}]   ;;  %s3854_s0 = inlined_call_operand.vmem [shape: f32[64,256], index: 0, kind: input, shape index: {}]   ;;  %s3855_s3 = inlined_call_operand.vmem [shape: f32[128,384], index: 3, kind: input, shape index: {}]   ;;  %s3856_s2 = inlined_call_operand.vmem [shape: f32[1,384], index: 2, kind: input, shape index: {}]   ;;  %s3857_s4 = inlined_call_operand.vmem [shape: f32[1,128], index: 4, kind: input, shape index: {}]   ;;  %s3858_s5 = inlined_call_operand.vmem [shape: f32[8,128], index: 5, kind: output, shape index: {}]  }
   0x1   :  { %v37_v0 = vld [vmem:[%s3853_s1 + $0x8] sm:$0xff]  ;;  %v40_v1 = vld [vmem:[%s3853_s1 + $0x20] sm:$0xff]  ;;  %v39_v4 = vld [vmem:[%s3853_s1 + $0x18] sm:$0xff] }
   0x2   :  { %v36_v2 = vld [vmem:[%s3853_s1] sm:$0xff]  ;;  %v2291_v3 = vpack.c.bf16 %v40_v1, %v37_v0  ;;  %v43_v5 = vld [vmem:[%s3853_s1 + $0x38] sm:$0xff]  ;;  %v46_v6 = vld [vmem:[%s3853_s1 + $0x50] sm:$0xff] }
   0x3   :  { %v2293_v7 = vpack.c.bf16 %v39_v4, %v36_v2  ;;  %v2295_v8 = vpack.c.bf16 %v46_v6, %v43_v5  ;;  %v42_v9 = vld [vmem:[%s3853_s1 + $0x30] sm:$0xff]  ;;  %v45_v10 = vld [vmem:[%s3853_s1 + $0x48] sm:$0xff]  ;;  %v52_v12 = vld [vmem:[%s3853_s1 + $0x80] sm:$0xff] }
   0x4   :  { %v49_v11 = vld [vmem:[%s3853_s1 + $0x68] sm:$0xff]  ;;  %2292 = vmatprep.subr.bf16.mxu0 %v2291_v3  ;;  %v2297_v13 = vpack.c.bf16 %v45_v10, %v42_v9  ;;  %v48_v15 = vld [vmem:[%s3853_s1 + $0x60] sm:$0xff]  ;;  %v51_v16 = vld [vmem:[%s3853_s1 + $0x78] sm:$0xff] }
   0x5   :  { %2294 = vmatpush1.bf16.msra.mxu0 %v2293_v7  ;;  %v2299_v14 = vpack.c.bf16 %v52_v12, %v49_v11  ;;  %v55_v17 = vld [vmem:[%s3853_s1 + $0x98] sm:$0xff]  ;;  %v58_v18 = vld [vmem:[%s3853_s1 + $0xb0] sm:$0xff]  ;;  %v2301_v19 = vpack.c.bf16 %v51_v16, %v48_v15  ;;  %v57_v22 = vld [vmem:[%s3853_s1 + $0xa8] sm:$0xff] }
   0x6   :  { %2296 = vmatprep.subr.bf16.mxu0 %v2295_v8  ;;  %v2303_v20 = vpack.c.bf16 %v58_v18, %v55_v17  ;;  %v54_v21 = vld [vmem:[%s3853_s1 + $0x90] sm:$0xff]  ;;  %v61_v23 = vld [vmem:[%s3853_s1 + $0xc8] sm:$0xff]  ;;  %v64_v24 = vld [vmem:[%s3853_s1 + $0xe0] sm:$0xff] }
   0x7   :  { %v2305_v25 = vpack.c.bf16 %v57_v22, %v54_v21  ;;  %v2307_v26 = vpack.c.bf16 %v64_v24, %v61_v23  ;;  %v60_v27 = vld [vmem:[%s3853_s1 + $0xc0] sm:$0xff]  ;;  %v63_v28 = vld [vmem:[%s3853_s1 + $0xd8] sm:$0xff]  ;;  %v70_v30 = vld [vmem:[%s3853_s1 + $0x110] sm:$0xff] }
   0x8   :  { %v67_v29 = vld [vmem:[%s3853_s1 + $0xf8] sm:$0xff]  ;;  %v2309_v31 = vpack.c.bf16 %v63_v28, %v60_v27  ;;  %v66_v33 = vld [vmem:[%s3853_s1 + $0xf0] sm:$0xff]  ;;  %v69_v34 = vld [vmem:[%s3853_s1 + $0x108] sm:$0xff] }
   0x9   :  { %2298 = vmatpush1.bf16.msra.mxu0 %v2297_v13  ;;  %v2311_v32 = vpack.c.bf16 %v70_v30, %v67_v29  ;;  %v73_v35 = vld [vmem:[%s3853_s1 + $0x128] sm:$0xff]  ;;  %v76_v36 = vld [vmem:[%s3853_s1 + $0x140] sm:$0xff]  ;;  %v2313_v37 = vpack.c.bf16 %v69_v34, %v66_v33  ;;  %v86_v38 = vld [vmem:[%s3853_s1 + $0x190] sm:$0xff] }
   0xa   :  { %2300 = vmatprep.subr.bf16.mxu0 %v2299_v14  ;;  %v89_v39 = vld [vmem:[%s3853_s1 + $0x1a8] sm:$0xff]  ;;  %v38_v40 = vld [vmem:[%s3853_s1 + $0x10] sm:$0xff]  ;;  %v2315_v41 = vpack.c.bf16 %v76_v36, %v73_v35  ;;  %v72_v42 = vld [vmem:[%s3853_s1 + $0x120] sm:$0xff] }
   0xb   :  { %v75_v43 = vld [vmem:[%s3853_s1 + $0x138] sm:$0xff]  ;;  %v2355_v44 = vpack.c.bf16 %v89_v39, %v86_v38  ;;  %v41_v45 = vld [vmem:[%s3853_s1 + $0x28] sm:$0xff]  ;;  %v82_v47 = vld [vmem:[%s3853_s1 + $0x170] sm:$0xff] }
   0xc   :  { %v79_v46 = vld [vmem:[%s3853_s1 + $0x158] sm:$0xff]  ;;  %v2357_v48 = vpack.c.bf16 %v41_v45, %v38_v40  ;;  %v92_v49 = vld [vmem:[%s3853_s1 + $0x1c0] sm:$0xff]  ;;  %v21_v51 = vld [vmem:[%s3854_s0 + $0x8] sm:$0xff]  ;;  %v2317_v53 = vpack.c.bf16 %v75_v43, %v72_v42 }
   0xd   :  { %2302 = vmatpush1.bf16.msra.mxu0 %v2301_v19  ;;  %2356 = vmatprep.subr.bf16.mxu1 %v2355_v44  ;;  %v95_v50 = vld [vmem:[%s3853_s1 + $0x1d8] sm:$0xff]  ;;  %v44_v52 = vld [vmem:[%s3853_s1 + $0x40] sm:$0xff]  ;;  %v2319_v56 = vpack.c.bf16 %v82_v47, %v79_v46  ;;  %v78_v57 = vld [vmem:[%s3853_s1 + $0x150] sm:$0xff] }
   0xe   :  { %2304 = vmatprep.subr.bf16.mxu0 %v2303_v20  ;;  %2358 = vmatpush3.bf16.msra.mxu1 %v2357_v48  ;;  %v2359_v54 = vpack.c.bf16 %v95_v50, %v92_v49  ;;  %v47_v55 = vld [vmem:[%s3853_s1 + $0x58] sm:$0xff]  ;;  %v81_v58 = vld [vmem:[%s3853_s1 + $0x168] sm:$0xff]  ;;  %v88_v61 = vld [vmem:[%s3853_s1 + $0x1a0] sm:$0xff] }
   0xf   :  { %v85_v59 = vld [vmem:[%s3853_s1 + $0x188] sm:$0xff]  ;;  %213 = vmatprep.mubr.f32.mxu0 %v21_v51  ;;  %v2361_v60 = vpack.c.bf16 %v47_v55, %v44_v52  ;;  %v98_v62 = vld [vmem:[%s3853_s1 + $0x1f0] sm:$0xff]  ;;  %326 = vmatprep.mubr.f32.mxu1 %v21_v51  ;;  %v2321_v3 = vpack.c.bf16 %v81_v58, %v78_v57  ;;  %v84_v4 = vld [vmem:[%s3853_s1 + $0x180] sm:$0xff] }
  0x10   :  { %2360 = vmatprep.subr.bf16.mxu1 %v2359_v54  ;;  %v101_v63 = vld [vmem:[%s3853_s1 + $0x208] sm:$0xff]  ;;  %v50_v1 = vld [vmem:[%s3853_s1 + $0x70] sm:$0xff]  ;;  %v87_v5 = vld [vmem:[%s3853_s1 + $0x198] sm:$0xff]  ;;  %v2323_v7 = vpack.c.bf16 %v88_v61, %v85_v59 }
  0x11   :  { %2306 = vmatpush1.bf16.msra.mxu0 %v2305_v25  ;;  %v2363_v0 = vpack.c.bf16 %v101_v63, %v98_v62  ;;  %v53_v2 = vld [vmem:[%s3853_s1 + $0x88] sm:$0xff]  ;;  %v91_v8 = vld [vmem:[%s3853_s1 + $0x1b8] sm:$0xff]  ;;  %v104_v9 = vld [vmem:[%s3853_s1 + $0x220] sm:$0xff]  ;;  %v2325_v15 = vpack.c.bf16 %v87_v5, %v84_v4 }
  0x12   :  { %2308 = vmatprep.subr.bf16.mxu0 %v2307_v26  ;;  %2362 = vmatpush3.bf16.msra.mxu1 %v2361_v60  ;;  %v2365_v6 = vpack.c.bf16 %v53_v2, %v50_v1  ;;  %v107_v10 = vld [vmem:[%s3853_s1 + $0x238] sm:$0xff]  ;;  %v94_v11 = vld [vmem:[%s3853_s1 + $0x1d0] sm:$0xff]  ;;  %v56_v13 = vld [vmem:[%s3853_s1 + $0xa0] sm:$0xff] }
  0x13   :  { %2364 = vmatprep.subr.bf16.mxu1 %v2363_v0  ;;  %v2367_v12 = vpack.c.bf16 %v107_v10, %v104_v9  ;;  %v59_v14 = vld [vmem:[%s3853_s1 + $0xb8] sm:$0xff]  ;;  %v90_v16 = vld [vmem:[%s3853_s1 + $0x1b0] sm:$0xff]  ;;  %v2327_v19 = vpack.c.bf16 %v94_v11, %v91_v8  ;;  %v93_v20 = vld [vmem:[%s3853_s1 + $0x1c8] sm:$0xff] }
  0x14   :  { %v2369_v17 = vpack.c.bf16 %v59_v14, %v56_v13  ;;  %v110_v18 = vld [vmem:[%s3853_s1 + $0x250] sm:$0xff]  ;;  %v113_v21 = vld [vmem:[%s3853_s1 + $0x268] sm:$0xff]  ;;  %v100_v24 = vld [vmem:[%s3853_s1 + $0x200] sm:$0xff]  ;;  %v2329_v27 = vpack.c.bf16 %v93_v20, %v90_v16  ;;  %v2950_v13 = vmov 0.0|0.0  }
  0x15   :  { %2310 = vmatpush1.bf16.msra.mxu0 %v2309_v31  ;;  %v62_v22 = vld [vmem:[%s3853_s1 + $0xd0] sm:$0xff]  ;;  %v97_v23 = vld [vmem:[%s3853_s1 + $0x1e8] sm:$0xff]  ;;  %v2371_v25 = vpack.c.bf16 %v113_v21, %v110_v18  ;;  %v96_v28 = vld [vmem:[%s3853_s1 + $0x1e0] sm:$0xff] }
  0x16   :  { %2312 = vmatprep.subr.bf16.mxu0 %v2311_v32  ;;  %2366 = vmatpush3.bf16.msra.mxu1 %v2365_v6  ;;  %v65_v26 = vld [vmem:[%s3853_s1 + $0xe8] sm:$0xff]  ;;  %v116_v30 = vld [vmem:[%s3853_s1 + $0x280] sm:$0xff]  ;;  %v119_v31 = vld [vmem:[%s3853_s1 + $0x298] sm:$0xff]  ;;  %v2331_v32 = vpack.c.bf16 %v100_v24, %v97_v23 }
  0x17   :  { %2368 = vmatprep.subr.bf16.mxu1 %v2367_v12  ;;  %v2373_v29 = vpack.c.bf16 %v65_v26, %v62_v22  ;;  %v99_v33 = vld [vmem:[%s3853_s1 + $0x1f8] sm:$0xff]  ;;  %v2375_v34 = vpack.c.bf16 %v119_v31, %v116_v30  ;;  %v68_v35 = vld [vmem:[%s3853_s1 + $0x100] sm:$0xff]  ;;  %v106_v38 = vld [vmem:[%s3853_s1 + $0x230] sm:$0xff] }
  0x18   :  { %v71_v36 = vld [vmem:[%s3853_s1 + $0x118] sm:$0xff]  ;;  %v122_v39 = vld [vmem:[%s3853_s1 + $0x2b0] sm:$0xff]  ;;  %v125_v40 = vld [vmem:[%s3853_s1 + $0x2c8] sm:$0xff] }
  0x19   :  { %2314 = vmatpush1.bf16.msra.mxu0 %v2313_v37  ;;  %v103_v37 = vld [vmem:[%s3853_s1 + $0x218] sm:$0xff]  ;;  %v102_v42 = vld [vmem:[%s3853_s1 + $0x210] sm:$0xff]  ;;  %v2377_v43 = vpack.c.bf16 %v71_v36, %v68_v35  ;;  %v105_v45 = vld [vmem:[%s3853_s1 + $0x228] sm:$0xff]  ;;  %v2379_v46 = vpack.c.bf16 %v125_v40, %v122_v39 }
  0x1a   :  { %2316 = vmatprep.subr.bf16.mxu0 %v2315_v41  ;;  %2370 = vmatpush3.bf16.msra.mxu1 %v2369_v17  ;;  %v2333_v41 = vpack.c.bf16 %v99_v33, %v96_v28  ;;  %v2335_v44 = vpack.c.bf16 %v106_v38, %v103_v37  ;;  %v74_v47 = vld [vmem:[%s3853_s1 + $0x130] sm:$0xff]  ;;  %v77_v48 = vld [vmem:[%s3853_s1 + $0x148] sm:$0xff]  ;;  %v112_v50 = vld [vmem:[%s3853_s1 + $0x260] sm:$0xff] }
  0x1b   :  { %2372 = vmatprep.subr.bf16.mxu1 %v2371_v25  ;;  %v109_v49 = vld [vmem:[%s3853_s1 + $0x248] sm:$0xff]  ;;  %v128_v51 = vld [vmem:[%s3853_s1 + $0x2e0] sm:$0xff]  ;;  %v131_v52 = vld [vmem:[%s3853_s1 + $0x2f8] sm:$0xff]  ;;  %v2381_v55 = vpack.c.bf16 %v77_v48, %v74_v47 }
  0x1c   :  { %v108_v54 = vld [vmem:[%s3853_s1 + $0x240] sm:$0xff]  ;;  %v111_v57 = vld [vmem:[%s3853_s1 + $0x258] sm:$0xff]  ;;  %v2383_v58 = vpack.c.bf16 %v131_v52, %v128_v51  ;;  %v118_v62 = vld [vmem:[%s3853_s1 + $0x290] sm:$0xff] }
  0x1d   :  { %2318 = vmatpush1.bf16.msra.mxu0 %v2317_v53  ;;  %v2337_v53 = vpack.c.bf16 %v105_v45, %v102_v42  ;;  %v80_v59 = vld [vmem:[%s3853_s1 + $0x160] sm:$0xff]  ;;  %v83_v60 = vld [vmem:[%s3853_s1 + $0x178] sm:$0xff]  ;;  %v2341_v63 = vpack.c.bf16 %v111_v57, %v108_v54  ;;  %v114_v0 = vld [vmem:[%s3853_s1 + $0x270] sm:$0xff] }
  0x1e   :  { %2320 = vmatprep.subr.bf16.mxu0 %v2319_v56  ;;  %2374 = vmatpush3.bf16.msra.mxu1 %v2373_v29  ;;  %v2339_v56 = vpack.c.bf16 %v112_v50, %v109_v49  ;;  %v115_v61 = vld [vmem:[%s3853_s1 + $0x278] sm:$0xff]  ;;  %v2385_v1 = vpack.c.bf16 %v83_v60, %v80_v59  ;;  %v393_v4 = vld [vmem:[%s3855_s3 + $0x10] sm:$0xff]  ;;  %v396_v5 = vld [vmem:[%s3855_s3 + $0x28] sm:$0xff] }
  0x1f   :  { %2376 = vmatprep.subr.bf16.mxu1 %v2375_v34  ;;  %v2343_v2 = vpack.c.bf16 %v118_v62, %v115_v61  ;;  %v121_v6 = vld [vmem:[%s3853_s1 + $0x2a8] sm:$0xff]  ;;  %v120_v9 = vld [vmem:[%s3853_s1 + $0x2a0] sm:$0xff]  ;;  %v3265_v10 = vpack.c.bf16 %v396_v5, %v393_v4  ;;  %v123_v12 = vld [vmem:[%s3853_s1 + $0x2b8] sm:$0xff] }
  0x20   :  { %v399_v14 = vld [vmem:[%s3855_s3 + $0x40] sm:$0xff]  ;;  %v127_v16 = vld [vmem:[%s3853_s1 + $0x2d8] sm:$0xff]  ;;  %v130_v17 = vld [vmem:[%s3853_s1 + $0x2f0] sm:$0xff] }
  0x21   :  { %2322 = vmatpush1.bf16.msra.mxu0 %v2321_v3  ;;  %v117_v3 = vld [vmem:[%s3853_s1 + $0x288] sm:$0xff]  ;;  %v20_v18 = vld [vmem:[%s3854_s0] sm:$0xff]  ;;  %v126_v20 = vld [vmem:[%s3853_s1 + $0x2d0] sm:$0xff]  ;;  %v2351_v23 = vpack.c.bf16 %v130_v17, %v127_v16 }
  0x22   :  { %2324 = vmatprep.subr.bf16.mxu0 %v2323_v7  ;;  %2378 = vmatpush3.bf16.msra.mxu1 %v2377_v43  ;;  %v124_v7 = vld [vmem:[%s3853_s1 + $0x2c0] sm:$0xff]  ;;  %v2345_v8 = vpack.c.bf16 %v117_v3, %v114_v0  ;;  %v23_v21 = vld [vmem:[%s3854_s0 + $0x18] sm:$0xff]  ;;  %v129_v24 = vld [vmem:[%s3853_s1 + $0x2e8] sm:$0xff] }
  0x23   :  { %2380 = vmatprep.subr.bf16.mxu1 %v2379_v46  ;;  %v2347_v11 = vpack.c.bf16 %v124_v7, %v121_v6  ;;  %v405_v25 = vld [vmem:[%s3855_s3 + $0x70] sm:$0xff]  ;;  %v408_v26 = vld [vmem:[%s3855_s3 + $0x88] sm:$0xff]  ;;  %v395_v28 = vld [vmem:[%s3855_s3 + $0x20] sm:$0xff]  ;;  %v2353_v30 = vpack.c.bf16 %v129_v24, %v126_v20 }
  0x24   :  { %v22_v29 = vld [vmem:[%s3854_s0 + $0x10] sm:$0xff]  ;;  %v391_v31 = vld [vmem:[%s3855_s3] sm:$0xff]  ;;  %v3321_v33 = vpack.c.bf16 %v408_v26, %v405_v25  ;;  %v394_v35 = vld [vmem:[%s3855_s3 + $0x18] sm:$0xff] }
  0x25   :  { %2326 = vmatpush1.bf16.msra.mxu0 %v2325_v15  ;;  %v402_v15 = vld [vmem:[%s3855_s3 + $0x58] sm:$0xff]  ;;  %v401_v37 = vld [vmem:[%s3855_s3 + $0x50] sm:$0xff]  ;;  %v24_v38 = vld [vmem:[%s3854_s0 + $0x20] sm:$0xff] }
  0x26   :  { %2328 = vmatprep.subr.bf16.mxu0 %v2327_v19  ;;  %2382 = vmatpush3.bf16.msra.mxu1 %v2381_v55  ;;  %v2349_v19 = vpack.c.bf16 %v123_v12, %v120_v9  ;;  %v3293_v22 = vpack.c.bf16 %v402_v15, %v399_v14  ;;  %v398_v36 = vld [vmem:[%s3855_s3 + $0x38] sm:$0xff]  ;;  %v411_v39 = vld [vmem:[%s3855_s3 + $0xa0] sm:$0xff]  ;;  %v397_v42 = vld [vmem:[%s3855_s3 + $0x30] sm:$0xff] }
  0x27   :  { %2384 = vmatprep.subr.bf16.mxu1 %v2383_v58  ;;  %v414_v40 = vld [vmem:[%s3855_s3 + $0xb8] sm:$0xff]  ;;  %v400_v45 = vld [vmem:[%s3855_s3 + $0x48] sm:$0xff]  ;;  %v407_v47 = vld [vmem:[%s3855_s3 + $0x80] sm:$0xff] }
  0x28   :  { %v27_v43 = vld [vmem:[%s3854_s0 + $0x38] sm:$0xff]  ;;  %v404_v46 = vld [vmem:[%s3855_s3 + $0x68] sm:$0xff]  ;;  %v3365_v48 = vpack.c.bf16 %v414_v40, %v411_v39  ;;  %v26_v49 = vld [vmem:[%s3854_s0 + $0x30] sm:$0xff]  ;;  %v3378_v52 = vpack.c.bf16 %v400_v45, %v397_v42  ;;  %v2952_v42 = vmov 0.0  }
  0x29   :  { %2330 = vmatpush1.bf16.msra.mxu0 %v2329_v27  ;;  %v392_v27 = vld [vmem:[%s3855_s3 + $0x8] sm:$0xff]  ;;  %v417_v50 = vld [vmem:[%s3855_s3 + $0xd0] sm:$0xff]  ;;  %v406_v54 = vld [vmem:[%s3855_s3 + $0x78] sm:$0xff]  ;;  %v3387_v55 = vpack.c.bf16 %v407_v47, %v404_v46 }
  0x2a   :  { %2332 = vmatprep.subr.bf16.mxu0 %v2331_v32  ;;  %2386 = vmatpush3.bf16.msra.mxu1 %v2385_v1  ;;  %v25_v32 = vld [vmem:[%s3854_s0 + $0x28] sm:$0xff]  ;;  %v3323_v34 = vpack.c.bf16 %v395_v28, %v392_v27  ;;  %v413_v57 = vld [vmem:[%s3855_s3 + $0xb0] sm:$0xff]  ;;  %v28_v60 = vld [vmem:[%s3854_s0 + $0x40] sm:$0xff] }
  0x2b   :  { %2419 = vmatprep.subr.bf16.mxu1 %v2950_v13  ;;  %v420_v51 = vld [vmem:[%s3855_s3 + $0xe8] sm:$0xff]  ;;  %v423_v61 = vld [vmem:[%s3855_s3 + $0x100] sm:$0xff]  ;;  %v426_v62 = vld [vmem:[%s3855_s3 + $0x118] sm:$0xff] }
  0x2c   :  { %v29_v58 = vld [vmem:[%s3854_s0 + $0x48] sm:$0xff]  ;;  %v3399_v59 = vpack.c.bf16 %v420_v51, %v417_v50  ;;  %v409_v0 = vld [vmem:[%s3855_s3 + $0x90] sm:$0xff]  ;;  %v419_v4 = vld [vmem:[%s3855_s3 + $0xe0] sm:$0xff]  ;;  %v3433_v6 = vpack.c.bf16 %v426_v62, %v423_v61  ;;  %v134_v50 = vlaneseq }
  0x2d   :  { %2334 = vmatpush1.bf16.msra.mxu0 %v2333_v41  ;;  %327 = vmatmul.mubr.f32.vlgmr.msra.gmra.mrb[0].mxu1 %v20_v18  ;;  %v3344_v41 = vpack.c.bf16 %v394_v35, %v391_v31  ;;  %v412_v1 = vld [vmem:[%s3855_s3 + $0xa8] sm:$0xff]  ;;  %v31_v5 = vld [vmem:[%s3854_s0 + $0x58] sm:$0xff]  ;;  %v30_v7 = vld [vmem:[%s3854_s0 + $0x50] sm:$0xff] }
  0x2e   :  { %2336 = vmatprep.subr.bf16.mxu0 %v2335_v44  ;;  %2421 = vmatpush3.bf16.msra.mxu1 %v3265_v10  ;;  %v3354_v44 = vpack.c.bf16 %v401_v37, %v398_v36  ;;  %v416_v3 = vld [vmem:[%s3855_s3 + $0xc8] sm:$0xff]  ;;  %v415_v12 = vld [vmem:[%s3855_s3 + $0xc0] sm:$0xff]  ;;  %v418_v14 = vld [vmem:[%s3855_s3 + $0xd8] sm:$0xff]  ;;  %v135_v51 = vshrl.u32 %v134_v50, 7 }
  0x2f   :  { %331 = vmatprep.mubr.f32.mxu1 %v23_v21  ;;  %2422 = vmatprep.subr.bf16.mxu1 %v2950_v13  ;;  %v432_v9 = vld [vmem:[%s3855_s3 + $0x148] sm:$0xff]  ;;  %v3455_v15 = vpack.c.bf16 %v419_v4, %v416_v3  ;;  %v422_v16 = vld [vmem:[%s3855_s3 + $0xf8] sm:$0xff]  ;;  %v425_v17 = vld [vmem:[%s3855_s3 + $0x110] sm:$0xff]  ;;  %v3480_v24 = vpack.c.bf16 %v418_v14, %v415_v12 }
  0x30   :  { %v32_v20 = vld [vmem:[%s3854_s0 + $0x60] sm:$0xff]  ;;  %v3483_v25 = vpack.c.bf16 %v425_v17, %v422_v16  ;;  %v421_v26 = vld [vmem:[%s3855_s3 + $0xf0] sm:$0xff]  ;;  %v424_v27 = vld [vmem:[%s3855_s3 + $0x108] sm:$0xff]  ;;  %v136_v50 = vsub.s32 0, %v135_v51 }
  0x31   :  { %2338 = vmatpush1.bf16.msra.mxu0 %v2337_v53  ;;  %332 = vmatmul.mubr.f32.gmra.mrb[2].mxu1 %v22_v29  ;;  %v403_v53 = vld [vmem:[%s3855_s3 + $0x60] sm:$0xff]  ;;  %v35_v28 = vld [vmem:[%s3854_s0 + $0x78] sm:$0xff]  ;;  %v3508_v35 = vpack.c.bf16 %v424_v27, %v421_v26  ;;  %v437_v40 = vld [vmem:[%s3855_s3 + $0x170] sm:$0xff] }
  0x32   :  { %2340 = vmatprep.subr.bf16.mxu0 %v2339_v56  ;;  %2424 = vmatpush3.bf16.msra.mxu1 %v3293_v22  ;;  %v410_v56 = vld [vmem:[%s3855_s3 + $0x98] sm:$0xff]  ;;  %v431_v31 = vld [vmem:[%s3855_s3 + $0x140] sm:$0xff]  ;;  %v433_v46 = vld [vmem:[%s3855_s3 + $0x150] sm:$0xff] }
  0x33   :  { %336 = vmatprep.mubr.f32.mxu1 %v25_v32  ;;  %2425 = vmatprep.subr.bf16.mxu1 %v2950_v13  ;;  %v427_v37 = vld [vmem:[%s3855_s3 + $0x120] sm:$0xff]  ;;  %v434_v39 = vld [vmem:[%s3855_s3 + $0x158] sm:$0xff]  ;;  %v436_v47 = vld [vmem:[%s3855_s3 + $0x168] sm:$0xff] }
  0x34   :  { %v3533_v45 = vpack.c.bf16 %v437_v40, %v434_v39 }
  0x35   :  { %2342 = vmatpush1.bf16.msra.mxu0 %v2341_v63  ;;  %337 = vmatmul.mubr.f32.gmra.mrb[4].mxu1 %v24_v38  ;;  %v3412_v63 = vpack.c.bf16 %v406_v54, %v403_v53 }
  0x36   :  { %2344 = vmatprep.subr.bf16.mxu0 %v2343_v2  ;;  %2427 = vmatpush3.bf16.msra.mxu1 %v3321_v33  ;;  %v3421_v2 = vpack.c.bf16 %v413_v57, %v410_v56  ;;  %v144_v56 = vsub.s32 2, %v135_v51 }
  0x37   :  { %341 = vmatprep.mubr.f32.mxu1 %v27_v43  ;;  %2428 = vmatprep.subr.bf16.mxu1 %v2950_v13 }
  0x39   :  { %2346 = vmatpush1.bf16.msra.mxu0 %v2345_v8  ;;  %342 = vmatmul.mubr.f32.gmra.mrb[6].mxu1 %v26_v49  ;;  %v429_v8 = vld [vmem:[%s3855_s3 + $0x130] sm:$0xff] }
  0x3a   :  { %2348 = vmatprep.subr.bf16.mxu0 %v2347_v11  ;;  %2430 = vmatpush3.bf16.msra.mxu1 %v3365_v48  ;;  %v3446_v11 = vpack.c.bf16 %v412_v1, %v409_v0 }
  0x3b   :  { %346 = vmatprep.mubr.f32.mxu1 %v29_v58  ;;  %2431 = vmatprep.subr.bf16.mxu1 %v2950_v13 }
  0x3d   :  { %2350 = vmatpush1.bf16.msra.mxu0 %v2349_v19  ;;  %347 = vmatmul.mubr.f32.gmra.mrb[8].mxu1 %v28_v60  ;;  %v3467_v19 = vpack.c.bf16 %v432_v9, %v429_v8 }
  0x3e   :  { %2352 = vmatprep.subr.bf16.mxu0 %v2351_v23  ;;  %2433 = vmatpush3.bf16.msra.mxu1 %v3399_v59  ;;  %v438_v23 = vld [vmem:[%s3855_s3 + $0x178] sm:$0xff] }
  0x3f   :  { %351 = vmatprep.mubr.f32.mxu1 %v31_v5  ;;  %2434 = vmatprep.subr.bf16.mxu1 %v2950_v13 }
  0x41   :  { %2354 = vmatpush1.bf16.msra.mxu0 %v2353_v30  ;;  %352 = vmatmul.mubr.f32.gmra.mrb[10].mxu1 %v30_v7  ;;  %v428_v30 = vld [vmem:[%s3855_s3 + $0x128] sm:$0xff] }
  0x42   :  { %2388 = vmatprep.subr.bf16.mxu0 %v3323_v34  ;;  %2436 = vmatpush3.bf16.msra.mxu1 %v3433_v6  ;;  %v3511_v36 = vpack.c.bf16 %v431_v31, %v428_v30 }
  0x43   :  { %2437 = vmatprep.subr.bf16.mxu1 %v2950_v13 }
  0x44   :  { %214 = vmatmul.mubr.f32.vlgmr.msra.gmra.mrb[0].mxu0 %v20_v18  ;;  %v33_v18 = vld [vmem:[%s3854_s0 + $0x68] sm:$0xff] }
  0x45   :  { %2390 = vmatpush1.bf16.msra.mxu0 %v3344_v41  ;;  %219 = vmatprep.mubr.f32.mxu0 %v23_v21  ;;  %v435_v21 = vld [vmem:[%s3855_s3 + $0x160] sm:$0xff] }
  0x46   :  { %2392 = vmatprep.subr.bf16.mxu0 %v3354_v44  ;;  %356 = vmatprep.mubr.f32.mxu1 %v33_v18 }
  0x47   :  { %357 = vmatmul.mubr.f32.gmra.mrb[12].mxu1 %v32_v20 }
  0x48   :  { %220 = vmatmul.mubr.f32.gmra.mrb[2].mxu0 %v22_v29  ;;  %2439 = vmatpush3.bf16.msra.mxu1 %v3467_v19  ;;  %v3495_v29 = vpack.c.bf16 %v438_v23, %v435_v21 }
  0x49   :  { %2394 = vmatpush1.bf16.msra.mxu0 %v3378_v52  ;;  %225 = vmatprep.mubr.f32.mxu0 %v25_v32  ;;  %v34_v32 = vld [vmem:[%s3854_s0 + $0x70] sm:$0xff] }
  0x4a   :  { %2396 = vmatprep.subr.bf16.mxu0 %v3387_v55  ;;  %361 = vmatprep.mubr.f32.mxu1 %v35_v28 }
  0x4b   :  { %2440 = vmatprep.subr.bf16.mxu1 %v2950_v13  ;;  %362 = vmatmul.mubr.f32.gmra.mrb[14].mxu1 %v34_v32 }
  0x4c   :  { %226 = vmatmul.mubr.f32.gmra.mrb[4].mxu0 %v24_v38  ;;  %v430_v38 = vld [vmem:[%s3855_s3 + $0x138] sm:$0xff]  ;;  %2442 = vmatpush3.bf16.msra.mxu1 %v3495_v29 }
  0x4d   :  { %2398 = vmatpush1.bf16.msra.mxu0 %v3412_v63  ;;  %231 = vmatprep.mubr.f32.mxu0 %v27_v43  ;;  %v3530_v43 = vpack.c.bf16 %v430_v38, %v427_v37 }
  0x4e   :  { %2400 = vmatprep.subr.bf16.mxu0 %v3421_v2  ;;  %2043 = vmatprep.mubr.msk.f32.mxu1 %vm2951_vm0, %v2952_v42 }
  0x4f   :  { %2475 = vmatprep.subr.bf16.mxu1 %v2950_v13  ;;  %2044 = vmatmul.mubr.f32.vlgmr.msra.gmra.mrb[16].mxu1 %v2952_v42 }
  0x50   :  { %232 = vmatmul.mubr.f32.gmra.mrb[6].mxu0 %v26_v49  ;;  %2477 = vmatpush3.bf16.msra.mxu1 %v3265_v10  ;;  %v3547_v49 = vpack.c.bf16 %v436_v47, %v433_v46 }
  0x51   :  { %2402 = vmatpush1.bf16.msra.mxu0 %v3446_v11  ;;  %237 = vmatprep.mubr.f32.mxu0 %v29_v58  ;;  %v132_v58 = vld [vmem:[%s3856_s2] sm:$0x7] }
  0x52   :  { %2404 = vmatprep.subr.bf16.mxu0 %v3455_v15  ;;  %2078 = vmatprep.mubr.msk.f32.mxu1 %vm2951_vm0, %v2952_v42  ;;  %v145_v62 = vrot.slane %v132_v58, %v144_v56 }
  0x53   :  { %2478 = vmatprep.subr.bf16.mxu1 %v2950_v13 }
  0x54   :  { %238 = vmatmul.mubr.f32.gmra.mrb[8].mxu0 %v28_v60  ;;  %2480 = vmatpush3.bf16.msra.mxu1 %v3293_v22 }
  0x55   :  { %2406 = vmatpush1.bf16.msra.mxu0 %v3480_v24  ;;  %243 = vmatprep.mubr.f32.mxu0 %v31_v5 }
  0x56   :  { %2408 = vmatprep.subr.bf16.mxu0 %v3483_v25  ;;  %2481 = vmatprep.subr.bf16.mxu1 %v2950_v13 }
  0x58   :  { %244 = vmatmul.mubr.f32.gmra.mrb[10].mxu0 %v30_v7  ;;  %2483 = vmatpush3.bf16.msra.mxu1 %v3321_v33 }
  0x59   :  { %2410 = vmatpush1.bf16.msra.mxu0 %v3508_v35  ;;  %249 = vmatprep.mubr.f32.mxu0 %v33_v18 }
  0x5a   :  { %2412 = vmatprep.subr.bf16.mxu0 %v3511_v36  ;;  %2484 = vmatprep.subr.bf16.mxu1 %v2950_v13 }
  0x5c   :  { %250 = vmatmul.mubr.f32.gmra.mrb[12].mxu0 %v32_v20  ;;  %2486 = vmatpush3.bf16.msra.mxu1 %v3365_v48 }
  0x5d   :  { %2414 = vmatpush1.bf16.msra.mxu0 %v3530_v43  ;;  %255 = vmatprep.mubr.f32.mxu0 %v35_v28 }
  0x5e   :  { %2416 = vmatprep.subr.bf16.mxu0 %v3533_v45  ;;  %2487 = vmatprep.subr.bf16.mxu1 %v2950_v13 }
  0x60   :  { %256 = vmatmul.mubr.f32.gmra.mrb[14].mxu0 %v34_v32  ;;  %2489 = vmatpush3.bf16.msra.mxu1 %v3399_v59 }
  0x61   :  { %2418 = vmatpush1.bf16.msra.mxu0 %v3547_v49  ;;  %510 = vmatprep.mubr.f32.mxu0 %v2952_v42 }
  0x62   :  { %2444 = vmatprep.subr.bf16.mxu0 %v3323_v34  ;;  %2490 = vmatprep.subr.bf16.mxu1 %v2950_v13 }
  0x64   :  { %511 = vmatmul.mubr.f32.vlgmr.msra.gmra.mrb[0].mxu0 %v2952_v42  ;;  %2492 = vmatpush3.bf16.msra.mxu1 %v3433_v6 }
  0x65   :  { %2446 = vmatpush1.bf16.msra.mxu0 %v3344_v41  ;;  %684 = vmatprep.mubr.f32.mxu0 %v2952_v42 }
  0x66   :  { %2448 = vmatprep.subr.bf16.mxu0 %v3354_v44  ;;  %2493 = vmatprep.subr.bf16.mxu1 %v2950_v13 }
  0x68   :  { %2495 = vmatpush3.bf16.msra.mxu1 %v3467_v19 }
  0x69   :  { %2450 = vmatpush1.bf16.msra.mxu0 %v3378_v52  ;;  %2496 = vmatprep.subr.bf16.mxu1 %v2950_v13 }
  0x6a   :  { %2452 = vmatprep.subr.bf16.mxu0 %v3387_v55 }
  0x6c   :  { %2498 = vmatpush3.bf16.msra.mxu1 %v3495_v29 }
  0x6d   :  { %2454 = vmatpush1.bf16.msra.mxu0 %v3412_v63  ;;  %2531 = vmatprep.subr.bf16.mxu1 %v2950_v13 }
  0x6e   :  { %2456 = vmatprep.subr.bf16.mxu0 %v3421_v2 }
  0x71   :  { %2458 = vmatpush1.bf16.msra.mxu0 %v3446_v11 }
  0x72   :  { %2460 = vmatprep.subr.bf16.mxu0 %v3455_v15 }
  0x75   :  { %2462 = vmatpush1.bf16.msra.mxu0 %v3480_v24 }
  0x76   :  { %2464 = vmatprep.subr.bf16.mxu0 %v3483_v25 }
  0x79   :  { %2466 = vmatpush1.bf16.msra.mxu0 %v3508_v35 }
  0x7a   :  { %2468 = vmatprep.subr.bf16.mxu0 %v3511_v36 }
  0x7d   :  { %2470 = vmatpush1.bf16.msra.mxu0 %v3530_v43 }
  0x7e   :  { %2472 = vmatprep.subr.bf16.mxu0 %v3533_v45 }
  0x81   :  { %2474 = vmatpush1.bf16.msra.mxu0 %v3547_v49 }
  0x82   :  { %2500 = vmatprep.subr.bf16.mxu0 %v3323_v34 }
 0x100   :  { %v1851_v53 = vpop.f32.mrb[0].mxu1 }
 0x101   :  { %v1852_v54 = vpop.f32.mrb[1].mxu1 }
 0x102   :  { %v1853_v57 = vadd.f32 %v1852_v54, %v1851_v53  ;;  %v3602_v53 = vrot.slane %v132_v58, %v136_v50 }
 0x104   :  { %v1854_v60 = vpop.f32.mrb[2].mxu1 }
 0x105   :  { %v1855_v61 = vpop.f32.mrb[3].mxu1 }
 0x106   :  { %v1856_v0 = vadd.f32 %v1855_v61, %v1854_v60  ;;  %v140_v60 = vsub.s32 1, %v135_v51 }
 0x108   :  { %v3588_v1 = vadd.f32 %v1856_v0, %v145_v62  ;;  %v1857_v3 = vpop.f32.mrb[4].mxu1 }
 0x109   :  { %v1858_v4 = vpop.f32.mrb[5].mxu1 }
 0x10a   :  { %v1859_v5 = vadd.f32 %v1858_v4, %v1857_v3  ;;  %v3605_v3 = vrot.slane %v132_v58, %v140_v60 }
 0x10c   :  { %v3590_v7 = vadd.f32 %v1859_v5, %v145_v62  ;;  %v1860_v8 = vpop.f32.mrb[6].mxu1 }
 0x10d   :  { %v1861_v9 = vpop.f32.mrb[7].mxu1 }
 0x10e   :  { %v1862_v12 = vadd.f32 %v1861_v9, %v1860_v8 }
 0x110   :  { %v3592_v14 = vadd.f32 %v1862_v12, %v145_v62  ;;  %v1863_v16 = vpop.f32.mrb[8].mxu1  ;;  %v3611_v12 = vld [vmem:[%s3857_s4] ss:$0 sm:$0xff] }
 0x111   :  { %v1864_v17 = vpop.f32.mrb[9].mxu1 }
 0x112   :  { %v1865_v18 = vadd.f32 %v1864_v17, %v1863_v16 }
 0x114   :  { %v3594_v20 = vadd.f32 %v1865_v18, %v145_v62  ;;  %v1866_v21 = vpop.f32.mrb[10].mxu1  ;;  %v329_v18 = vadd.f32 %v1853_v57, %v145_v62 }
 0x115   :  { %v1867_v23 = vpop.f32.mrb[11].mxu1 }
 0x116   :  { %v1868_v26 = vadd.f32 %v1867_v23, %v1866_v21 }
 0x118   :  { %v3596_v27 = vadd.f32 %v1868_v26, %v145_v62 }
 0x11a   :  { %v1869_v28 = vpop.f32.mrb[12].mxu1 }
 0x11b   :  { %v1870_v30 = vpop.f32.mrb[13].mxu1 }
 0x11c   :  { %v1871_v31 = vadd.f32 %v1870_v30, %v1869_v28 }
 0x11e   :  { %v3598_v32 = vadd.f32 %v1871_v31, %v145_v62  ;;  %v1872_v37 = vpop.f32.mrb[14].mxu1 }
 0x11f   :  { %v1873_v38 = vpop.f32.mrb[15].mxu1 }
 0x120   :  { %v1874_v39 = vadd.f32 %v1873_v38, %v1872_v37 }
 0x122   :  { %v3600_v40 = vadd.f32 %v1874_v39, %v145_v62  ;;  %v583_v46 = vpop.f32.mrb[16].mxu1 }
 0x123   :  { %v2045_v47 = vpop.f32.mrb[17].mxu1  ;;  %v607_v16 = vadd.f32 %v3611_v12, %v583_v46 }
 0x137   :  { %v512_v54 = vpop.f32.mrb[0].mxu0 }
 0x138   :  { %v2835_v56 = vadd.f32 %v512_v54, %v3602_v53  ;;  %v514_v61 = vpop.f32.mrb[1].mxu0 }
 0x139   :  { %v2836_v4 = vadd.f32 %v514_v61, %v3605_v3 }
 0x13a   :  { %v1802_v0 = vmul.f32 -1.442695, %v2835_v56 }
 0x13b   :  { %v1803_v5 = vmul.f32 -1.442695, %v2836_v4 }
 0x13c   :  { %2870 = vpow2.f32 %v1802_v0 }
 0x13d   :  { %2872 = vpow2.f32 %v1803_v5 }
 0x146   :  { %v2871_v8 = vpop.eup %2870 }
 0x147   :  { %v591_v9 = vadd.f32 1.0, %v2871_v8  ;;  %v2873_v51 = vpop.eup %2872 }
 0x148   :  { %v598_v58 = vadd.f32 1.0, %v2873_v51 }
 0x149   :  { %2874 = vrcp.f32 %v591_v9 }
 0x153   :  { %v2875_v17 = vpop.eup %2874 }
 0x154   :  { %v608_v21 = vmul.f32 %v2875_v17, %v607_v16 }
 0x156   :  { %v609_v23 = vadd.f32 %v608_v21, %v329_v18 }
 0x158   :  { %2876 = vtanh.f32 %v609_v23 }
 0x159   :  { %2878 = vrcp.f32 %v598_v58 }
 0x162   :  { %v2877_v26 = vpop.eup %2876 }
 0x163   :  { %v611_v28 = vsub.f32 0.0, %v2877_v26  ;;  %v2879_v30 = vpop.eup %2878 }
 0x165   :  { %v612_v31 = vmul.f32 %v2879_v30, %v611_v28 }
 0x167   :  { %v613_v37 = vadd.f32 %v2877_v26, %v612_v31 }
 0x169   :  { %685 = vmatmul.mubr.f32.vlgmr.msra.gmra.mrb[2].mxu0 %v613_v37  ;;  %2079 = vmatmul.mubr.f32.vlgmr.msra.gmra.mrb[18].mxu1 %v613_v37 }
 0x16a   :  { %2502 = vmatpush1.bf16.msra.mxu0 %v3344_v41  ;;  %2533 = vmatpush3.bf16.msra.mxu1 %v3265_v10 }
 0x16b   :  { %2504 = vmatprep.subr.bf16.mxu0 %v3354_v44  ;;  %2534 = vmatprep.subr.bf16.mxu1 %v2950_v13 }
 0x16c   :  { %852 = vmatprep.mubr.f32.mxu0 %v2952_v42  ;;  %2113 = vmatprep.mubr.msk.f32.mxu1 %vm2951_vm0, %v2952_v42 }
 0x16e   :  { %2506 = vmatpush1.bf16.msra.mxu0 %v3378_v52  ;;  %2536 = vmatpush3.bf16.msra.mxu1 %v3293_v22 }
 0x16f   :  { %2508 = vmatprep.subr.bf16.mxu0 %v3387_v55  ;;  %2537 = vmatprep.subr.bf16.mxu1 %v2950_v13 }
 0x172   :  { %2510 = vmatpush1.bf16.msra.mxu0 %v3412_v63  ;;  %2539 = vmatpush3.bf16.msra.mxu1 %v3321_v33 }
 0x173   :  { %2512 = vmatprep.subr.bf16.mxu0 %v3421_v2  ;;  %2540 = vmatprep.subr.bf16.mxu1 %v2950_v13 }
 0x176   :  { %2514 = vmatpush1.bf16.msra.mxu0 %v3446_v11  ;;  %2542 = vmatpush3.bf16.msra.mxu1 %v3365_v48 }
 0x177   :  { %2516 = vmatprep.subr.bf16.mxu0 %v3455_v15  ;;  %2543 = vmatprep.subr.bf16.mxu1 %v2950_v13 }
 0x17a   :  { %2518 = vmatpush1.bf16.msra.mxu0 %v3480_v24  ;;  %2545 = vmatpush3.bf16.msra.mxu1 %v3399_v59 }
 0x17b   :  { %2520 = vmatprep.subr.bf16.mxu0 %v3483_v25  ;;  %2546 = vmatprep.subr.bf16.mxu1 %v2950_v13 }
 0x17e   :  { %2522 = vmatpush1.bf16.msra.mxu0 %v3508_v35  ;;  %2548 = vmatpush3.bf16.msra.mxu1 %v3433_v6 }
 0x17f   :  { %2524 = vmatprep.subr.bf16.mxu0 %v3511_v36  ;;  %2549 = vmatprep.subr.bf16.mxu1 %v2950_v13 }
 0x182   :  { %2526 = vmatpush1.bf16.msra.mxu0 %v3530_v43  ;;  %2551 = vmatpush3.bf16.msra.mxu1 %v3467_v19 }
 0x183   :  { %2528 = vmatprep.subr.bf16.mxu0 %v3533_v45  ;;  %2552 = vmatprep.subr.bf16.mxu1 %v2950_v13 }
 0x186   :  { %2530 = vmatpush1.bf16.msra.mxu0 %v3547_v49  ;;  %2554 = vmatpush3.bf16.msra.mxu1 %v3495_v29 }
 0x187   :  { %2556 = vmatprep.subr.bf16.mxu0 %v3323_v34  ;;  %2587 = vmatprep.subr.bf16.mxu1 %v2950_v13 }
 0x23c   :  { %v686_v57 = vpop.f32.mrb[2].mxu0  ;;  %v757_v62 = vpop.f32.mrb[18].mxu1 }
 0x23d   :  { %v2837_v38 = vadd.f32 %v686_v57, %v3602_v53  ;;  %v688_v39 = vpop.f32.mrb[3].mxu0  ;;  %v2080_v46 = vpop.f32.mrb[19].mxu1  ;;  %v775_v0 = vadd.f32 %v3611_v12, %v757_v62 }
 0x23e   :  { %v2838_v50 = vadd.f32 %v688_v39, %v3605_v3 }
 0x23f   :  { %v1805_v47 = vmul.f32 -1.442695, %v2837_v38 }
 0x240   :  { %v1806_v54 = vmul.f32 -1.442695, %v2838_v50 }
 0x241   :  { %2880 = vpow2.f32 %v1805_v47 }
 0x242   :  { %2882 = vpow2.f32 %v1806_v54 }
 0x24b   :  { %v2881_v56 = vpop.eup %2880 }
 0x24c   :  { %v765_v60 = vadd.f32 1.0, %v2881_v56  ;;  %v2883_v61 = vpop.eup %2882 }
 0x24d   :  { %v772_v9 = vadd.f32 1.0, %v2883_v61 }
 0x24e   :  { %2884 = vrcp.f32 %v765_v60 }
 0x258   :  { %v2885_v4 = vpop.eup %2884 }
 0x259   :  { %v776_v5 = vmul.f32 %v2885_v4, %v775_v0 }
 0x25b   :  { %v777_v8 = vadd.f32 %v776_v5, %v3588_v1 }
 0x25d   :  { %2886 = vtanh.f32 %v777_v8 }
 0x25e   :  { %2888 = vrcp.f32 %v772_v9 }
 0x267   :  { %v2887_v16 = vpop.eup %2886 }
 0x268   :  { %v779_v51 = vsub.f32 %v613_v37, %v2887_v16  ;;  %v2889_v17 = vpop.eup %2888 }
 0x26a   :  { %v780_v18 = vmul.f32 %v2889_v17, %v779_v51 }
 0x26c   :  { %v781_v21 = vadd.f32 %v2887_v16, %v780_v18 }
 0x26e   :  { %853 = vmatmul.mubr.f32.vlgmr.msra.gmra.mrb[4].mxu0 %v781_v21  ;;  %2114 = vmatmul.mubr.f32.vlgmr.msra.gmra.mrb[20].mxu1 %v781_v21 }
 0x26f   :  { %2558 = vmatpush1.bf16.msra.mxu0 %v3344_v41  ;;  %2589 = vmatpush3.bf16.msra.mxu1 %v3265_v10 }
 0x270   :  { %2560 = vmatprep.subr.bf16.mxu0 %v3354_v44  ;;  %2590 = vmatprep.subr.bf16.mxu1 %v2950_v13 }
 0x271   :  { %1020 = vmatprep.mubr.f32.mxu0 %v2952_v42  ;;  %2148 = vmatprep.mubr.msk.f32.mxu1 %vm2951_vm0, %v2952_v42 }
 0x273   :  { %2562 = vmatpush1.bf16.msra.mxu0 %v3378_v52  ;;  %2592 = vmatpush3.bf16.msra.mxu1 %v3293_v22 }
 0x274   :  { %2564 = vmatprep.subr.bf16.mxu0 %v3387_v55  ;;  %2593 = vmatprep.subr.bf16.mxu1 %v2950_v13 }
 0x277   :  { %2566 = vmatpush1.bf16.msra.mxu0 %v3412_v63  ;;  %2595 = vmatpush3.bf16.msra.mxu1 %v3321_v33 }
 0x278   :  { %2568 = vmatprep.subr.bf16.mxu0 %v3421_v2  ;;  %2596 = vmatprep.subr.bf16.mxu1 %v2950_v13 }
 0x27b   :  { %2570 = vmatpush1.bf16.msra.mxu0 %v3446_v11  ;;  %2598 = vmatpush3.bf16.msra.mxu1 %v3365_v48 }
 0x27c   :  { %2572 = vmatprep.subr.bf16.mxu0 %v3455_v15  ;;  %2599 = vmatprep.subr.bf16.mxu1 %v2950_v13 }
 0x27f   :  { %2574 = vmatpush1.bf16.msra.mxu0 %v3480_v24  ;;  %2601 = vmatpush3.bf16.msra.mxu1 %v3399_v59 }
 0x280   :  { %2576 = vmatprep.subr.bf16.mxu0 %v3483_v25  ;;  %2602 = vmatprep.subr.bf16.mxu1 %v2950_v13 }
 0x283   :  { %2578 = vmatpush1.bf16.msra.mxu0 %v3508_v35  ;;  %2604 = vmatpush3.bf16.msra.mxu1 %v3433_v6 }
 0x284   :  { %2580 = vmatprep.subr.bf16.mxu0 %v3511_v36  ;;  %2605 = vmatprep.subr.bf16.mxu1 %v2950_v13 }
 0x287   :  { %2582 = vmatpush1.bf16.msra.mxu0 %v3530_v43  ;;  %2607 = vmatpush3.bf16.msra.mxu1 %v3467_v19 }
 0x288   :  { %2584 = vmatprep.subr.bf16.mxu0 %v3533_v45  ;;  %2608 = vmatprep.subr.bf16.mxu1 %v2950_v13 }
 0x28b   :  { %2586 = vmatpush1.bf16.msra.mxu0 %v3547_v49  ;;  %2610 = vmatpush3.bf16.msra.mxu1 %v3495_v29 }
 0x28c   :  { %2612 = vmatprep.subr.bf16.mxu0 %v3323_v34  ;;  %2643 = vmatprep.subr.bf16.mxu1 %v2950_v13 }
 0x341   :  { %v854_v1 = vpop.f32.mrb[4].mxu0  ;;  %v925_v58 = vpop.f32.mrb[20].mxu1 }
 0x342   :  { %v2839_v23 = vadd.f32 %v854_v1, %v3602_v53  ;;  %v856_v26 = vpop.f32.mrb[5].mxu0  ;;  %v2115_v28 = vpop.f32.mrb[21].mxu1  ;;  %v943_v39 = vadd.f32 %v3611_v12, %v925_v58 }
 0x343   :  { %v2840_v31 = vadd.f32 %v856_v26, %v3605_v3 }
 0x344   :  { %v1807_v30 = vmul.f32 -1.442695, %v2839_v23 }
 0x345   :  { %v1808_v37 = vmul.f32 -1.442695, %v2840_v31 }
 0x346   :  { %2890 = vpow2.f32 %v1807_v30 }
 0x347   :  { %2892 = vpow2.f32 %v1808_v37 }
 0x350   :  { %v2891_v57 = vpop.eup %2890 }
 0x351   :  { %v933_v62 = vadd.f32 1.0, %v2891_v57  ;;  %v2893_v38 = vpop.eup %2892 }
 0x352   :  { %v940_v54 = vadd.f32 1.0, %v2893_v38 }
 0x353   :  { %2894 = vrcp.f32 %v933_v62 }
 0x35d   :  { %v2895_v46 = vpop.eup %2894 }
 0x35e   :  { %v944_v47 = vmul.f32 %v2895_v46, %v943_v39 }
 0x360   :  { %v945_v50 = vadd.f32 %v944_v47, %v3590_v7 }
 0x362   :  { %2896 = vtanh.f32 %v945_v50 }
 0x363   :  { %2898 = vrcp.f32 %v940_v54 }
 0x36c   :  { %v2897_v56 = vpop.eup %2896 }
 0x36d   :  { %v947_v60 = vsub.f32 %v781_v21, %v2897_v56  ;;  %v2899_v61 = vpop.eup %2898 }
 0x36f   :  { %v948_v0 = vmul.f32 %v2899_v61, %v947_v60 }
 0x371   :  { %v949_v4 = vadd.f32 %v2897_v56, %v948_v0 }
 0x373   :  { %1021 = vmatmul.mubr.f32.vlgmr.msra.gmra.mrb[6].mxu0 %v949_v4  ;;  %2149 = vmatmul.mubr.f32.vlgmr.msra.gmra.mrb[22].mxu1 %v949_v4 }
 0x374   :  { %2614 = vmatpush1.bf16.msra.mxu0 %v3344_v41  ;;  %2645 = vmatpush3.bf16.msra.mxu1 %v3265_v10 }
 0x375   :  { %2616 = vmatprep.subr.bf16.mxu0 %v3354_v44  ;;  %2646 = vmatprep.subr.bf16.mxu1 %v2950_v13 }
 0x376   :  { %1188 = vmatprep.mubr.f32.mxu0 %v2952_v42  ;;  %2183 = vmatprep.mubr.msk.f32.mxu1 %vm2951_vm0, %v2952_v42 }
 0x378   :  { %2618 = vmatpush1.bf16.msra.mxu0 %v3378_v52  ;;  %2648 = vmatpush3.bf16.msra.mxu1 %v3293_v22 }
 0x379   :  { %2620 = vmatprep.subr.bf16.mxu0 %v3387_v55  ;;  %2649 = vmatprep.subr.bf16.mxu1 %v2950_v13 }
 0x37c   :  { %2622 = vmatpush1.bf16.msra.mxu0 %v3412_v63  ;;  %2651 = vmatpush3.bf16.msra.mxu1 %v3321_v33 }
 0x37d   :  { %2624 = vmatprep.subr.bf16.mxu0 %v3421_v2  ;;  %2652 = vmatprep.subr.bf16.mxu1 %v2950_v13 }
 0x380   :  { %2626 = vmatpush1.bf16.msra.mxu0 %v3446_v11  ;;  %2654 = vmatpush3.bf16.msra.mxu1 %v3365_v48 }
 0x381   :  { %2628 = vmatprep.subr.bf16.mxu0 %v3455_v15  ;;  %2655 = vmatprep.subr.bf16.mxu1 %v2950_v13 }
 0x384   :  { %2630 = vmatpush1.bf16.msra.mxu0 %v3480_v24  ;;  %2657 = vmatpush3.bf16.msra.mxu1 %v3399_v59 }
 0x385   :  { %2632 = vmatprep.subr.bf16.mxu0 %v3483_v25  ;;  %2658 = vmatprep.subr.bf16.mxu1 %v2950_v13 }
 0x388   :  { %2634 = vmatpush1.bf16.msra.mxu0 %v3508_v35  ;;  %2660 = vmatpush3.bf16.msra.mxu1 %v3433_v6 }
 0x389   :  { %2636 = vmatprep.subr.bf16.mxu0 %v3511_v36  ;;  %2661 = vmatprep.subr.bf16.mxu1 %v2950_v13 }
 0x38c   :  { %2638 = vmatpush1.bf16.msra.mxu0 %v3530_v43  ;;  %2663 = vmatpush3.bf16.msra.mxu1 %v3467_v19 }
 0x38d   :  { %2640 = vmatprep.subr.bf16.mxu0 %v3533_v45  ;;  %2664 = vmatprep.subr.bf16.mxu1 %v2950_v13 }
 0x390   :  { %2642 = vmatpush1.bf16.msra.mxu0 %v3547_v49  ;;  %2666 = vmatpush3.bf16.msra.mxu1 %v3495_v29 }
 0x391   :  { %2668 = vmatprep.subr.bf16.mxu0 %v3323_v34  ;;  %2699 = vmatprep.subr.bf16.mxu1 %v2950_v13 }
 0x446   :  { %v1022_v7 = vpop.f32.mrb[6].mxu0  ;;  %v1093_v5 = vpop.f32.mrb[22].mxu1 }
 0x447   :  { %v2841_v8 = vadd.f32 %v1022_v7, %v3602_v53  ;;  %v1024_v9 = vpop.f32.mrb[7].mxu0  ;;  %v2150_v16 = vpop.f32.mrb[23].mxu1  ;;  %v1111_v23 = vadd.f32 %v3611_v12, %v1093_v5 }
 0x448   :  { %v2842_v17 = vadd.f32 %v1024_v9, %v3605_v3 }
 0x449   :  { %v1809_v51 = vmul.f32 -1.442695, %v2841_v8 }
 0x44a   :  { %v1810_v18 = vmul.f32 -1.442695, %v2842_v17 }
 0x44b   :  { %2900 = vpow2.f32 %v1809_v51 }
 0x44c   :  { %2902 = vpow2.f32 %v1810_v18 }
 0x455   :  { %v2901_v21 = vpop.eup %2900 }
 0x456   :  { %v1101_v1 = vadd.f32 1.0, %v2901_v21  ;;  %v2903_v58 = vpop.eup %2902 }
 0x457   :  { %v1108_v31 = vadd.f32 1.0, %v2903_v58 }
 0x458   :  { %2904 = vrcp.f32 %v1101_v1 }
 0x462   :  { %v2905_v26 = vpop.eup %2904 }
 0x463   :  { %v1112_v28 = vmul.f32 %v2905_v26, %v1111_v23 }
 0x465   :  { %v1113_v30 = vadd.f32 %v1112_v28, %v3592_v14 }
 0x467   :  { %2906 = vtanh.f32 %v1113_v30 }
 0x468   :  { %2908 = vrcp.f32 %v1108_v31 }
 0x471   :  { %v2907_v37 = vpop.eup %2906 }
 0x472   :  { %v1115_v57 = vsub.f32 %v949_v4, %v2907_v37  ;;  %v2909_v62 = vpop.eup %2908 }
 0x474   :  { %v1116_v38 = vmul.f32 %v2909_v62, %v1115_v57 }
 0x476   :  { %v1117_v39 = vadd.f32 %v2907_v37, %v1116_v38 }
 0x478   :  { %1189 = vmatmul.mubr.f32.vlgmr.msra.gmra.mrb[8].mxu0 %v1117_v39  ;;  %2184 = vmatmul.mubr.f32.vlgmr.msra.gmra.mrb[24].mxu1 %v1117_v39 }
 0x479   :  { %2670 = vmatpush1.bf16.msra.mxu0 %v3344_v41  ;;  %2701 = vmatpush3.bf16.msra.mxu1 %v3265_v10 }
 0x47a   :  { %2672 = vmatprep.subr.bf16.mxu0 %v3354_v44  ;;  %2702 = vmatprep.subr.bf16.mxu1 %v2950_v13 }
 0x47b   :  { %1356 = vmatprep.mubr.f32.mxu0 %v2952_v42  ;;  %2218 = vmatprep.mubr.msk.f32.mxu1 %vm2951_vm0, %v2952_v42 }
 0x47d   :  { %2674 = vmatpush1.bf16.msra.mxu0 %v3378_v52  ;;  %2704 = vmatpush3.bf16.msra.mxu1 %v3293_v22 }
 0x47e   :  { %2676 = vmatprep.subr.bf16.mxu0 %v3387_v55  ;;  %2705 = vmatprep.subr.bf16.mxu1 %v2950_v13 }
 0x481   :  { %2678 = vmatpush1.bf16.msra.mxu0 %v3412_v63  ;;  %2707 = vmatpush3.bf16.msra.mxu1 %v3321_v33 }
 0x482   :  { %2680 = vmatprep.subr.bf16.mxu0 %v3421_v2  ;;  %2708 = vmatprep.subr.bf16.mxu1 %v2950_v13 }
 0x485   :  { %2682 = vmatpush1.bf16.msra.mxu0 %v3446_v11  ;;  %2710 = vmatpush3.bf16.msra.mxu1 %v3365_v48 }
 0x486   :  { %2684 = vmatprep.subr.bf16.mxu0 %v3455_v15  ;;  %2711 = vmatprep.subr.bf16.mxu1 %v2950_v13 }
 0x489   :  { %2686 = vmatpush1.bf16.msra.mxu0 %v3480_v24  ;;  %2713 = vmatpush3.bf16.msra.mxu1 %v3399_v59 }
 0x48a   :  { %2688 = vmatprep.subr.bf16.mxu0 %v3483_v25  ;;  %2714 = vmatprep.subr.bf16.mxu1 %v2950_v13 }
 0x48d   :  { %2690 = vmatpush1.bf16.msra.mxu0 %v3508_v35  ;;  %2716 = vmatpush3.bf16.msra.mxu1 %v3433_v6 }
 0x48e   :  { %2692 = vmatprep.subr.bf16.mxu0 %v3511_v36  ;;  %2717 = vmatprep.subr.bf16.mxu1 %v2950_v13 }
 0x491   :  { %2694 = vmatpush1.bf16.msra.mxu0 %v3530_v43  ;;  %2719 = vmatpush3.bf16.msra.mxu1 %v3467_v19 }
 0x492   :  { %2696 = vmatprep.subr.bf16.mxu0 %v3533_v45  ;;  %2720 = vmatprep.subr.bf16.mxu1 %v2950_v13 }
 0x495   :  { %2698 = vmatpush1.bf16.msra.mxu0 %v3547_v49  ;;  %2722 = vmatpush3.bf16.msra.mxu1 %v3495_v29 }
 0x496   :  { %2724 = vmatprep.subr.bf16.mxu0 %v3323_v34  ;;  %2755 = vmatprep.subr.bf16.mxu1 %v2950_v13 }
 0x54b   :  { %v1190_v14 = vpop.f32.mrb[8].mxu0  ;;  %v1261_v46 = vpop.f32.mrb[24].mxu1 }
 0x54c   :  { %v2843_v47 = vadd.f32 %v1190_v14, %v3602_v53  ;;  %v1192_v50 = vpop.f32.mrb[9].mxu0  ;;  %v2185_v54 = vpop.f32.mrb[25].mxu1  ;;  %v1279_v5 = vadd.f32 %v3611_v12, %v1261_v46 }
 0x54d   :  { %v2844_v60 = vadd.f32 %v1192_v50, %v3605_v3 }
 0x54e   :  { %v1811_v56 = vmul.f32 -1.442695, %v2843_v47 }
 0x54f   :  { %v1812_v61 = vmul.f32 -1.442695, %v2844_v60 }
 0x550   :  { %2910 = vpow2.f32 %v1811_v56 }
 0x551   :  { %2912 = vpow2.f32 %v1812_v61 }
 0x55a   :  { %v2911_v0 = vpop.eup %2910 }
 0x55b   :  { %v1269_v4 = vadd.f32 1.0, %v2911_v0  ;;  %v2913_v7 = vpop.eup %2912 }
 0x55c   :  { %v1276_v51 = vadd.f32 1.0, %v2913_v7 }
 0x55d   :  { %2914 = vrcp.f32 %v1269_v4 }
 0x567   :  { %v2915_v8 = vpop.eup %2914 }
 0x568   :  { %v1280_v9 = vmul.f32 %v2915_v8, %v1279_v5 }
 0x56a   :  { %v1281_v16 = vadd.f32 %v1280_v9, %v3594_v20 }
 0x56c   :  { %2916 = vtanh.f32 %v1281_v16 }
 0x56d   :  { %2918 = vrcp.f32 %v1276_v51 }
 0x576   :  { %v2917_v17 = vpop.eup %2916 }
 0x577   :  { %v1283_v18 = vsub.f32 %v1117_v39, %v2917_v17  ;;  %v2919_v21 = vpop.eup %2918 }
 0x579   :  { %v1284_v1 = vmul.f32 %v2919_v21, %v1283_v18 }
 0x57b   :  { %v1285_v58 = vadd.f32 %v2917_v17, %v1284_v1 }
 0x57d   :  { %1357 = vmatmul.mubr.f32.vlgmr.msra.gmra.mrb[10].mxu0 %v1285_v58  ;;  %2219 = vmatmul.mubr.f32.vlgmr.msra.gmra.mrb[26].mxu1 %v1285_v58 }
 0x57e   :  { %2726 = vmatpush1.bf16.msra.mxu0 %v3344_v41  ;;  %2757 = vmatpush3.bf16.msra.mxu1 %v3265_v10 }
 0x57f   :  { %2728 = vmatprep.subr.bf16.mxu0 %v3354_v44  ;;  %2758 = vmatprep.subr.bf16.mxu1 %v2950_v13 }
 0x580   :  { %1524 = vmatprep.mubr.f32.mxu0 %v2952_v42  ;;  %2253 = vmatprep.mubr.msk.f32.mxu1 %vm2951_vm0, %v2952_v42 }
 0x582   :  { %2730 = vmatpush1.bf16.msra.mxu0 %v3378_v52  ;;  %2760 = vmatpush3.bf16.msra.mxu1 %v3293_v22 }
 0x583   :  { %2732 = vmatprep.subr.bf16.mxu0 %v3387_v55  ;;  %2761 = vmatprep.subr.bf16.mxu1 %v2950_v13 }
 0x586   :  { %2734 = vmatpush1.bf16.msra.mxu0 %v3412_v63  ;;  %2763 = vmatpush3.bf16.msra.mxu1 %v3321_v33 }
 0x587   :  { %2736 = vmatprep.subr.bf16.mxu0 %v3421_v2  ;;  %2764 = vmatprep.subr.bf16.mxu1 %v2950_v13 }
 0x58a   :  { %2738 = vmatpush1.bf16.msra.mxu0 %v3446_v11  ;;  %2766 = vmatpush3.bf16.msra.mxu1 %v3365_v48 }
 0x58b   :  { %2740 = vmatprep.subr.bf16.mxu0 %v3455_v15  ;;  %2767 = vmatprep.subr.bf16.mxu1 %v2950_v13 }
 0x58e   :  { %2742 = vmatpush1.bf16.msra.mxu0 %v3480_v24  ;;  %2769 = vmatpush3.bf16.msra.mxu1 %v3399_v59 }
 0x58f   :  { %2744 = vmatprep.subr.bf16.mxu0 %v3483_v25  ;;  %2770 = vmatprep.subr.bf16.mxu1 %v2950_v13 }
 0x592   :  { %2746 = vmatpush1.bf16.msra.mxu0 %v3508_v35  ;;  %2772 = vmatpush3.bf16.msra.mxu1 %v3433_v6 }
 0x593   :  { %2748 = vmatprep.subr.bf16.mxu0 %v3511_v36  ;;  %2773 = vmatprep.subr.bf16.mxu1 %v2950_v13 }
 0x596   :  { %2750 = vmatpush1.bf16.msra.mxu0 %v3530_v43  ;;  %2775 = vmatpush3.bf16.msra.mxu1 %v3467_v19 }
 0x597   :  { %2752 = vmatprep.subr.bf16.mxu0 %v3533_v45  ;;  %2776 = vmatprep.subr.bf16.mxu1 %v2950_v13 }
 0x59a   :  { %2754 = vmatpush1.bf16.msra.mxu0 %v3547_v49  ;;  %2778 = vmatpush3.bf16.msra.mxu1 %v3495_v29 }
 0x59b   :  { %2780 = vmatprep.subr.bf16.mxu0 %v3323_v34  ;;  %2811 = vmatprep.subr.bf16.mxu1 %v2950_v13 }
 0x650   :  { %v1358_v20 = vpop.f32.mrb[10].mxu0  ;;  %v1429_v23 = vpop.f32.mrb[26].mxu1 }
 0x651   :  { %v2845_v26 = vadd.f32 %v1358_v20, %v3602_v53  ;;  %v1360_v28 = vpop.f32.mrb[11].mxu0  ;;  %v2220_v30 = vpop.f32.mrb[27].mxu1  ;;  %v1447_v34 = vadd.f32 %v3611_v12, %v1429_v23 }
 0x652   :  { %v2846_v37 = vadd.f32 %v1360_v28, %v3605_v3 }
 0x653   :  { %v1813_v31 = vmul.f32 -1.442695, %v2845_v26 }
 0x654   :  { %v1814_v57 = vmul.f32 -1.442695, %v2846_v37 }
 0x655   :  { %2920 = vpow2.f32 %v1813_v31 }
 0x656   :  { %2922 = vpow2.f32 %v1814_v57 }
 0x65f   :  { %v2921_v62 = vpop.eup %2920 }
 0x660   :  { %v1437_v38 = vadd.f32 1.0, %v2921_v62  ;;  %v2923_v39 = vpop.eup %2922 }
 0x661   :  { %v1444_v50 = vadd.f32 1.0, %v2923_v39 }
 0x662   :  { %2924 = vrcp.f32 %v1437_v38 }
 0x66c   :  { %v2925_v14 = vpop.eup %2924 }
 0x66d   :  { %v1448_v46 = vmul.f32 %v2925_v14, %v1447_v34 }
 0x66f   :  { %v1449_v47 = vadd.f32 %v1448_v46, %v3596_v27 }
 0x671   :  { %2926 = vtanh.f32 %v1449_v47 }
 0x672   :  { %2928 = vrcp.f32 %v1444_v50 }
 0x67b   :  { %v2927_v54 = vpop.eup %2926 }
 0x67c   :  { %v1451_v56 = vsub.f32 %v1285_v58, %v2927_v54  ;;  %v2929_v60 = vpop.eup %2928 }
 0x67e   :  { %v1452_v61 = vmul.f32 %v2929_v60, %v1451_v56 }
 0x680   :  { %v1453_v0 = vadd.f32 %v2927_v54, %v1452_v61 }
 0x682   :  { %1525 = vmatmul.mubr.f32.vlgmr.msra.gmra.mrb[12].mxu0 %v1453_v0  ;;  %2254 = vmatmul.mubr.f32.vlgmr.msra.gmra.mrb[28].mxu1 %v1453_v0 }
 0x683   :  { %2782 = vmatpush1.bf16.msra.mxu0 %v3344_v41  ;;  %2813 = vmatpush3.bf16.msra.mxu1 %v3265_v10 }
 0x684   :  { %2784 = vmatprep.subr.bf16.mxu0 %v3354_v44  ;;  %2814 = vmatprep.subr.bf16.mxu1 %v2950_v13 }
 0x685   :  { %1692 = vmatprep.mubr.f32.mxu0 %v2952_v42  ;;  %2288 = vmatprep.mubr.msk.f32.mxu1 %vm2951_vm0, %v2952_v42 }
 0x687   :  { %2786 = vmatpush1.bf16.msra.mxu0 %v3378_v52  ;;  %2816 = vmatpush3.bf16.msra.mxu1 %v3293_v22 }
 0x688   :  { %2788 = vmatprep.subr.bf16.mxu0 %v3387_v55  ;;  %2817 = vmatprep.subr.bf16.mxu1 %v2950_v13 }
 0x68b   :  { %2790 = vmatpush1.bf16.msra.mxu0 %v3412_v63  ;;  %2819 = vmatpush3.bf16.msra.mxu1 %v3321_v33 }
 0x68c   :  { %2792 = vmatprep.subr.bf16.mxu0 %v3421_v2  ;;  %2820 = vmatprep.subr.bf16.mxu1 %v2950_v13 }
 0x68f   :  { %2794 = vmatpush1.bf16.msra.mxu0 %v3446_v11  ;;  %2822 = vmatpush3.bf16.msra.mxu1 %v3365_v48 }
 0x690   :  { %2796 = vmatprep.subr.bf16.mxu0 %v3455_v15  ;;  %2823 = vmatprep.subr.bf16.mxu1 %v2950_v13 }
 0x693   :  { %2798 = vmatpush1.bf16.msra.mxu0 %v3480_v24  ;;  %2825 = vmatpush3.bf16.msra.mxu1 %v3399_v59 }
 0x694   :  { %2800 = vmatprep.subr.bf16.mxu0 %v3483_v25  ;;  %2826 = vmatprep.subr.bf16.mxu1 %v2950_v13 }
 0x697   :  { %2802 = vmatpush1.bf16.msra.mxu0 %v3508_v35  ;;  %2828 = vmatpush3.bf16.msra.mxu1 %v3433_v6 }
 0x698   :  { %2804 = vmatprep.subr.bf16.mxu0 %v3511_v36  ;;  %2829 = vmatprep.subr.bf16.mxu1 %v2950_v13 }
 0x69b   :  { %2806 = vmatpush1.bf16.msra.mxu0 %v3530_v43  ;;  %2831 = vmatpush3.bf16.msra.mxu1 %v3467_v19 }
 0x69c   :  { %2808 = vmatprep.subr.bf16.mxu0 %v3533_v45  ;;  %2832 = vmatprep.subr.bf16.mxu1 %v2950_v13 }
 0x69f   :  { %2810 = vmatpush1.bf16.msra.mxu0 %v3547_v49  ;;  %2834 = vmatpush3.bf16.msra.mxu1 %v3495_v29 }
 0x755   :  { %v1526_v10 = vpop.f32.mrb[12].mxu0  ;;  %v1597_v22 = vpop.f32.mrb[28].mxu1 }
 0x756   :  { %v2847_v33 = vadd.f32 %v1526_v10, %v3602_v53  ;;  %v1528_v41 = vpop.f32.mrb[13].mxu0  ;;  %v2255_v44 = vpop.f32.mrb[29].mxu1  ;;  %v1615_v2 = vadd.f32 %v3611_v12, %v1597_v22 }
 0x757   :  { %v2848_v52 = vadd.f32 %v1528_v41, %v3605_v3 }
 0x758   :  { %v1815_v48 = vmul.f32 -1.442695, %v2847_v33 }
 0x759   :  { %v1816_v55 = vmul.f32 -1.442695, %v2848_v52 }
 0x75a   :  { %2930 = vpow2.f32 %v1815_v48 }
 0x75b   :  { %2932 = vpow2.f32 %v1816_v55 }
 0x764   :  { %v2931_v59 = vpop.eup %2930 }
 0x765   :  { %v1605_v63 = vadd.f32 1.0, %v2931_v59  ;;  %v2933_v13 = vpop.eup %2932 }
 0x766   :  { %v1612_v19 = vadd.f32 1.0, %v2933_v13 }
 0x767   :  { %2934 = vrcp.f32 %v1605_v63 }
 0x771   :  { %v2935_v6 = vpop.eup %2934 }
 0x772   :  { %v1616_v11 = vmul.f32 %v2935_v6, %v1615_v2 }
 0x774   :  { %v1617_v15 = vadd.f32 %v1616_v11, %v3598_v32 }
 0x776   :  { %2936 = vtanh.f32 %v1617_v15 }
 0x777   :  { %2938 = vrcp.f32 %v1612_v19 }
 0x780   :  { %v2937_v24 = vpop.eup %2936 }
 0x781   :  { %v1619_v25 = vsub.f32 %v1453_v0, %v2937_v24  ;;  %v2939_v29 = vpop.eup %2938 }
 0x783   :  { %v1620_v35 = vmul.f32 %v2939_v29, %v1619_v25 }
 0x785   :  { %v1621_v36 = vadd.f32 %v2937_v24, %v1620_v35 }
 0x787   :  { %1693 = vmatmul.mubr.f32.vlgmr.msra.gmra.mrb[14].mxu0 %v1621_v36  ;;  %2289 = vmatmul.mubr.f32.vlgmr.msra.gmra.mrb[30].mxu1 %v1621_v36 }
 0x85a   :  { %v1694_v42 = vpop.f32.mrb[14].mxu0  ;;  %v1765_v43 = vpop.f32.mrb[30].mxu1 }
 0x85b   :  { %v2849_v45 = vadd.f32 %v1694_v42, %v3602_v53  ;;  %v1696_v49 = vpop.f32.mrb[15].mxu0  ;;  %v2290_v27 = vpop.f32.mrb[31].mxu1  ;;  %v1783_v16 = vadd.f32 %v3611_v12, %v1765_v43 }
 0x85c   :  { %v2850_v32 = vadd.f32 %v1696_v49, %v3605_v3 }
 0x85d   :  { %v1817_v4 = vmul.f32 -1.442695, %v2849_v45 }
 0x85e   :  { %v1818_v7 = vmul.f32 -1.442695, %v2850_v32 }
 0x85f   :  { %2940 = vpow2.f32 %v1817_v4 }
 0x860   :  { %2942 = vpow2.f32 %v1818_v7 }
 0x869   :  { %v2941_v5 = vpop.eup %2940 }
 0x86a   :  { %v1773_v8 = vadd.f32 1.0, %v2941_v5  ;;  %v2943_v9 = vpop.eup %2942 }
 0x86b   :  { %v1780_v21 = vadd.f32 1.0, %v2943_v9 }
 0x86c   :  { %2944 = vrcp.f32 %v1773_v8 }
 0x876   :  { %v2945_v51 = vpop.eup %2944 }
 0x877   :  { %v1784_v17 = vmul.f32 %v2945_v51, %v1783_v16 }
 0x879   :  { %v1785_v18 = vadd.f32 %v1784_v17, %v3600_v40 }
 0x87b   :  { %2946 = vtanh.f32 %v1785_v18 }
 0x87c   :  { %2948 = vrcp.f32 %v1780_v21 }
 0x885   :  { %v2947_v53 = vpop.eup %2946 }
 0x886   :  { %v1787_v1 = vsub.f32 %v1621_v36, %v2947_v53  ;;  %v2949_v58 = vpop.eup %2948 }
 0x888   :  { %v1788_v20 = vmul.f32 %v2949_v58, %v1787_v1 }
 0x88a   :  { %v1789_v3 = vadd.f32 %v2947_v53, %v1788_v20 }
 0x88c   :  { %1790 = vst [vmem:[%s3858_s5] sm:$0xff] %v1789_v3 }

</bundles_post_ra>
